<compile_context>
chip_gen: v5e
topology: v5e:2x2
jax: 0.10.0
libtpu: 0.0.40
codegen_flags: <defaults>
</compile_context>

<pallas_src>
import functools

import jax
import jax.numpy as jnp
from jax.experimental import pallas as pl
from jax.experimental.pallas import tpu as pltpu


def _pick_lane_tile(total, cap):
    """Lane-dense tile: full extent if small, else a multiple of 128 targeting
    >= 4 grid steps for pipelining, capped at `cap` (VMEM budget)."""
    if total <= 256:
        return int(total)
    quarter = (total // 4) // 128 * 128
    tile = max(128, min(cap, quarter if quarter > 0 else 128))
    return int(tile)


# ---------------------------------------------------------------------------
# Kernel 1: complex per-Fourier-mode channel mixing, all modes resident.
#   out_r[m] = Wr[m] @ xr[m] - Wi[m] @ xi[m]
#   out_i[m] = Wi[m] @ xr[m] + Wr[m] @ xi[m]
# Grid only tiles the flattened spatial axis; weights use a constant index_map
# so they are DMA'd once and stay in VMEM across all grid steps.
# ---------------------------------------------------------------------------
def _spectral_mix_kernel(xr_ref, xi_ref, wr_ref, wi_ref, or_ref, oi_ref):
    xr = xr_ref[...]
    xi = xi_ref[...]
    wr = wr_ref[...]
    wi = wi_ref[...]
    rr = jnp.einsum('moi,mij->moj', wr, xr, preferred_element_type=jnp.float32)
    ii = jnp.einsum('moi,mij->moj', wi, xi, preferred_element_type=jnp.float32)
    ir = jnp.einsum('moi,mij->moj', wi, xr, preferred_element_type=jnp.float32)
    ri = jnp.einsum('moi,mij->moj', wr, xi, preferred_element_type=jnp.float32)
    or_ref[...] = rr - ii
    oi_ref[...] = ir + ri


def spectral_mix(xr, xi, wr, wi, *, tm_cap=1024):
    # xr, xi: (modes, I, M) f32 ; wr, wi: (modes, O, I) f32
    modes, I, M = xr.shape
    O = wr.shape[1]
    tm = _pick_lane_tile(M, tm_cap)
    grid = (pl.cdiv(M, tm),)

    x_spec = pl.BlockSpec((modes, I, tm), lambda j: (0, 0, j))
    w_spec = pl.BlockSpec((modes, O, I), lambda j: (0, 0, 0))   # grid-resident
    o_spec = pl.BlockSpec((modes, O, tm), lambda j: (0, 0, j))

    cost = pl.CostEstimate(
        flops=int(8 * modes * O * I * M),
        transcendentals=0,
        bytes_accessed=int(4 * (2 * modes * I * M
                                + 2 * modes * O * I
                                + 2 * modes * O * M)),
    )
    out_r, out_i = pl.pallas_call(
        _spectral_mix_kernel,
        grid=grid,
        in_specs=[x_spec, x_spec, w_spec, w_spec],
        out_specs=[o_spec, o_spec],
        out_shape=[jax.ShapeDtypeStruct((modes, O, M), jnp.float32)] * 2,
        compiler_params=pltpu.CompilerParams(dimension_semantics=("parallel",)),
        cost_estimate=cost,
    )(xr, xi, wr, wi)
    return out_r, out_i


# ---------------------------------------------------------------------------
# Kernel 2: fused (xx + xy + xz) sum + both two-layer FeedForwards (eval mode)
#   x   = xx + xy + xz                                     (C, TN) channels-first
#   a   = relu(W1_stack @ x + b1_stack)                    (n_heads*H, TN), one matmul
#   o_h = W2_h @ a[h*H:(h+1)*H] + b2_h                     per head
# (dropout identity in eval; layer_norm=False, ff_weight_norm=False here)
# ---------------------------------------------------------------------------
def _make_sum_ffn_kernel(n_heads, H):
    def kernel(*refs):
        xx_ref, xy_ref, xz_ref, w1s_ref, b1s_ref = refs[:5]
        w2b2 = refs[5:5 + 2 * n_heads]
        out_refs = refs[5 + 2 * n_heads:]
        x = xx_ref[0] + xy_ref[0] + xz_ref[0]                       # (C, TN)
        a = jnp.maximum(
            jnp.dot(w1s_ref[...], x, preferred_element_type=jnp.float32)
            + b1s_ref[...], 0.0)                                    # (n_heads*H, TN)
        for h in range(n_heads):
            w2_ref, b2_ref = w2b2[2 * h], w2b2[2 * h + 1]
            ah = a[h * H:(h + 1) * H, :]
            out_refs[h][0] = (jnp.dot(w2_ref[...], ah,
                                      preferred_element_type=jnp.float32)
                              + b2_ref[...])
    return kernel


def fused_sum_ffn(xx, xy, xz, w1s, b1s, w2s, b2s, *, tn_cap=2048):
    # xx, xy, xz: (B, C, D) f32 ; w1s: (n_heads*H, C), b1s: (n_heads*H, 1)
    # w2s[h]: (C, H), b2s[h]: (C, 1)
    B, C, D = xx.shape
    n_heads = len(w2s)
    H = w1s.shape[0] // n_heads
    tn = _pick_lane_tile(D, tn_cap)
    grid = (B, pl.cdiv(D, tn))

    x_spec = pl.BlockSpec((1, C, tn), lambda b, j: (b, 0, j))

    def const2d(shape):
        return pl.BlockSpec(shape, lambda b, j: (0, 0))

    in_specs = [x_spec, x_spec, x_spec, const2d(w1s.shape), const2d(b1s.shape)]
    w_inputs = [w1s, b1s]
    for h in range(n_heads):
        w_inputs += [w2s[h], b2s[h]]
        in_specs += [const2d(w2s[h].shape), const2d(b2s[h].shape)]

    N = B * D
    cost = pl.CostEstimate(
        flops=int(4 * n_heads * C * H * N + 2 * C * N),
        transcendentals=0,
        bytes_accessed=int(4 * ((3 + n_heads) * C * N
                                + 2 * n_heads * (C * H + C + H))),
    )
    return pl.pallas_call(
        _make_sum_ffn_kernel(n_heads, H),
        grid=grid,
        in_specs=in_specs,
        out_specs=[pl.BlockSpec((1, C, tn), lambda b, j: (b, 0, j))] * n_heads,
        out_shape=[jax.ShapeDtypeStruct((B, C, D), jnp.float32)] * n_heads,
        compiler_params=pltpu.CompilerParams(
            dimension_semantics=("parallel", "parallel")),
        cost_estimate=cost,
    )(xx, xy, xz, *w_inputs)


# ---------------------------------------------------------------------------
# Parameter packing (done once per model, outside the forward)
# ---------------------------------------------------------------------------
def prepare_params(fw, backcast, forecast, use_fork=True):
    # fw[a]: (I, O, modes, 2) -> (wr, wi) each (modes, O, I)
    spectral_w = tuple(
        (jnp.transpose(w[..., 0], (2, 1, 0)).astype(jnp.float32),
         jnp.transpose(w[..., 1], (2, 1, 0)).astype(jnp.float32))
        for w in fw)
    heads = [backcast, forecast] if use_fork else [backcast]
    w1s = jnp.concatenate([h[0][0] for h in heads], axis=0).astype(jnp.float32)
    b1s = jnp.concatenate([h[0][1] for h in heads],
                          axis=0).reshape(-1, 1).astype(jnp.float32)
    w2s = tuple(h[1][0].astype(jnp.float32) for h in heads)
    b2s = tuple(h[1][1].reshape(-1, 1).astype(jnp.float32) for h in heads)
    return spectral_w, (w1s, b1s, w2s, b2s)


# ---------------------------------------------------------------------------
# forward_fourier glue (FFTs + scatter into truncated spectrum) around kernel 1
# ---------------------------------------------------------------------------
def _mix_one_axis(x_ft_modes, wr, wi):
    # x_ft_modes: complex64 (modes, I, M)
    xr = jnp.real(x_ft_modes).astype(jnp.float32)
    xi = jnp.imag(x_ft_modes).astype(jnp.float32)
    out_r, out_i = spectral_mix(xr, xi, wr, wi)
    return jax.lax.complex(out_r, out_i)                            # (modes, O, M)


def forward_fourier(x, spectral_w, out_dim, D1, D2, D3, mx, my, mz):
    B, I, S1, S2, S3 = x.shape

    # --- along z (last spatial dim) ---
    # TODO(synk): rfft/irfft have no Pallas equivalent; kept as jnp.fft glue.
    x_ftz = jnp.fft.rfft(x, axis=-1, norm='ortho')
    xm = jnp.moveaxis(x_ftz[..., :mz], (4, 1), (0, 1)).reshape(mz, I, B * S1 * S2)
    out = _mix_one_axis(xm, *spectral_w[2]).reshape(mz, out_dim, B, S1, S2)
    out = jnp.moveaxis(out, (0, 1), (4, 1))                          # (B, O, S1, S2, mz)
    out_ft = jnp.zeros((B, out_dim, D1, D2, D3 // 2 + 1), jnp.complex64)
    out_ft = out_ft.at[:, :, :min(S1, D1), :min(S2, D2), :mz].set(
        out[:, :, :min(S1, D1), :min(S2, D2), :])
    xz = jnp.fft.irfft(out_ft, n=D3, axis=-1, norm='ortho')

    # --- along y ---
    x_fty = jnp.fft.rfft(x, axis=-2, norm='ortho')
    xm = jnp.moveaxis(x_fty[:, :, :, :my, :], (3, 1), (0, 1)).reshape(my, I, B * S1 * S3)
    out = _mix_one_axis(xm, *spectral_w[1]).reshape(my, out_dim, B, S1, S3)
    out = jnp.moveaxis(out, (0, 1), (3, 1))                          # (B, O, S1, my, S3)
    out_ft = jnp.zeros((B, out_dim, D1, D2 // 2 + 1, D3), jnp.complex64)
    out_ft = out_ft.at[:, :, :min(S1, D1), :my, :min(S3, D3)].set(
        out[:, :, :min(S1, D1), :, :min(S3, D3)])
    xy = jnp.fft.irfft(out_ft, n=D2, axis=-2, norm='ortho')

    # --- along x ---
    x_ftx = jnp.fft.rfft(x, axis=-3, norm='ortho')
    xm = jnp.moveaxis(x_ftx[:, :, :mx, :, :], (2, 1), (0, 1)).reshape(mx, I, B * S2 * S3)
    out = _mix_one_axis(xm, *spectral_w[0]).reshape(mx, out_dim, B, S2, S3)
    out = jnp.moveaxis(out, (0, 1), (2, 1))                          # (B, O, mx, S2, S3)
    out_ft = jnp.zeros((B, out_dim, D1 // 2 + 1, D2, D3), jnp.complex64)
    out_ft = out_ft.at[:, :, :mx, :min(S2, D2), :min(S3, D3)].set(
        out[:, :, :, :min(S2, D2), :min(S3, D3)])
    xx = jnp.fft.irfft(out_ft, n=D1, axis=-3, norm='ortho')

    return xx, xy, xz


# ---------------------------------------------------------------------------
# Full module forward: spectral conv + fused backcast / forecast feed-forwards
# ---------------------------------------------------------------------------
def factorized_spectral_conv3d(x, spectral_w, ffn_packed, *,
                               D1, D2, D3, mx, my, mz):
    out_dim = spectral_w[0][0].shape[1]
    B = x.shape[0]
    xx, xy, xz = forward_fourier(x, spectral_w, out_dim, D1, D2, D3, mx, my, mz)

    D = D1 * D2 * D3
    # (B, O, D1, D2, D3) -> (B, O, D) is a contiguous (free) reshape; the per-point
    # MLP (permute(0,2,3,4,1) + Linear stack + permute back in PyTorch) is exactly a
    # channels-first matmul on this layout, so no transpose is ever materialized.
    xx3 = xx.reshape(B, out_dim, D)
    xy3 = xy.reshape(B, out_dim, D)
    xz3 = xz.reshape(B, out_dim, D)

    w1s, b1s, w2s, b2s = ffn_packed
    outs = fused_sum_ffn(xx3, xy3, xz3, w1s, b1s, w2s, b2s)

    b = outs[0].reshape(B, out_dim, D1, D2, D3)
    f = outs[1].reshape(B, out_dim, D1, D2, D3) if len(w2s) > 1 else None
    return b, f


# ---------------------------------------------------------------------------
# Deterministic parameter init (matches shapes of the PyTorch __init__)
# ---------------------------------------------------------------------------
def init_params(key, in_dim, out_dim, modes_x, modes_y, modes_z, factor):
    ks = jax.random.split(key, 11)

    def xavier(k, shape):
        fan_in = shape[1] * shape[2] * shape[3]
        fan_out = shape[0] * shape[2] * shape[3]
        std = (2.0 / (fan_in + fan_out)) ** 0.5
        return std * jax.random.normal(k, shape, jnp.float32)

    fw = [xavier(ks[0], (in_dim, out_dim, modes_x, 2)),
          xavier(ks[1], (in_dim, out_dim, modes_y, 2)),
          xavier(ks[2], (in_dim, out_dim, modes_z, 2))]

    H = out_dim * factor

    def linear(kw, kb, out_f, in_f):
        bound = (1.0 / in_f) ** 0.5
        w = jax.random.uniform(kw, (out_f, in_f), jnp.float32, -bound, bound)
        b = jax.random.uniform(kb, (out_f,), jnp.float32, -bound, bound)
        return w, b

    backcast = (linear(ks[3], ks[4], H, out_dim), linear(ks[5], ks[6], out_dim, H))
    forecast = (linear(ks[7], ks[8], H, out_dim), linear(ks[9], ks[10], out_dim, H))
    return fw, backcast, forecast


# ---------------------------------------------------------------------------
# Pure-JAX reference (mirrors the PyTorch forward, eval mode)
# ---------------------------------------------------------------------------
def reference_forward(x, fw, backcast, forecast, D1, D2, D3, mx, my, mz):
    def cplx(w):
        return w[..., 0] + 1j * w[..., 1]

    B, I, S1, S2, S3 = x.shape
    out_dim = fw[0].shape[1]

    x_ftz = jnp.fft.rfft(x, axis=-1, norm='ortho')
    out_ft = jnp.zeros((B, out_dim, D1, D2, D3 // 2 + 1), jnp.complex64)
    t = jnp.einsum('bixyz,ioz->boxyz', x_ftz[..., :mz], cplx(fw[2]))
    out_ft = out_ft.at[:, :, :min(S1, D1), :min(S2, D2), :mz].set(
        t[:, :, :min(S1, D1), :min(S2, D2), :])
    xz = jnp.fft.irfft(out_ft, n=D3, axis=-1, norm='ortho')

    x_fty = jnp.fft.rfft(x, axis=-2, norm='ortho')
    out_ft = jnp.zeros((B, out_dim, D1, D2 // 2 + 1, D3), jnp.complex64)
    t = jnp.einsum('bixyz,ioy->boxyz', x_fty[:, :, :, :my, :], cplx(fw[1]))
    out_ft = out_ft.at[:, :, :min(S1, D1), :my, :min(S3, D3)].set(
        t[:, :, :min(S1, D1), :, :min(S3, D3)])
    xy = jnp.fft.irfft(out_ft, n=D2, axis=-2, norm='ortho')

    x_ftx = jnp.fft.rfft(x, axis=-3, norm='ortho')
    out_ft = jnp.zeros((B, out_dim, D1 // 2 + 1, D2, D3), jnp.complex64)
    t = jnp.einsum('bixyz,iox->boxyz', x_ftx[:, :, :mx, :, :], cplx(fw[0]))
    out_ft = out_ft.at[:, :, :mx, :min(S2, D2), :min(S3, D3)].set(
        t[:, :, :, :min(S2, D2), :min(S3, D3)])
    xx = jnp.fft.irfft(out_ft, n=D1, axis=-3, norm='ortho')

    h = xx + xy + xz
    hp = jnp.transpose(h, (0, 2, 3, 4, 1))

    def ff(z, params):
        (w1, b1), (w2, b2) = params
        a = jnp.maximum(z @ w1.T + b1, 0.0)
        return a @ w2.T + b2

    b = jnp.transpose(ff(hp, backcast), (0, 4, 1, 2, 3))
    f = jnp.transpose(ff(hp, forecast), (0, 4, 1, 2, 3))
    return b, f


if __name__ == "__main__":
    key = jax.random.PRNGKey(0)
    kx, kp = jax.random.split(key)

    B, in_dim, out_dim = 2, 4, 4
    D1 = D2 = D3 = 16
    modes_x = modes_y = modes_z = 4
    factor = 2
    # Module config modeled: ff_weight_norm=False, n_ff_layers=2,
    # layer_norm=False, use_fork=True, dropout=0.0 (eval mode).
    # NOTE: production channel widths should be multiples of 8 (f32) to avoid
    # sublane-masked layouts; the toy shapes here are for correctness only.

    x = jax.random.normal(kx, (B, in_dim, D1, D2, D3), jnp.float32)
    fw, backcast, forecast = init_params(kp, in_dim, out_dim,
                                         modes_x, modes_y, modes_z, factor)

    # Weight packing happens once per model, not per forward call.
    spectral_w, ffn_packed = prepare_params(fw, backcast, forecast, use_fork=True)

    fwd = jax.jit(functools.partial(
        factorized_spectral_conv3d,
        D1=D1, D2=D2, D3=D3, mx=modes_x, my=modes_y, mz=modes_z))

    b, f = fwd(x, spectral_w, ffn_packed)
    jax.block_until_ready((b, f))

    b_ref, f_ref = reference_forward(x, fw, backcast, forecast,
                                     D1, D2, D3, modes_x, modes_y, modes_z)
    assert b.shape == (B, out_dim, D1, D2, D3) and f.shape == (B, out_dim, D1, D2, D3)
    assert jnp.allclose(b, b_ref, atol=1e-4, rtol=1e-4)
    assert jnp.allclose(f, f_ref, atol=1e-4, rtol=1e-4)

    print("KERNEL_OK")
</pallas_src>

<mosaic_0001>
module attributes {stable_mosaic.version = 11 : i64} {
  func.func @_spectral_mix_kernel(%arg0: i32, %arg1: memref<4x4x128xf32, #tpu.memory_space<vmem>>, %arg2: memref<4x4x128xf32, #tpu.memory_space<vmem>>, %arg3: memref<4x4x4xf32, #tpu.memory_space<vmem>>, %arg4: memref<4x4x4xf32, #tpu.memory_space<vmem>>, %arg5: memref<4x4x128xf32, #tpu.memory_space<vmem>>, %arg6: memref<4x4x128xf32, #tpu.memory_space<vmem>>) attributes {dimension_semantics = [#tpu.dimension_semantics<parallel>], iteration_bounds = array<i64: 4>, scalar_prefetch = 0 : i64, scratch_operands = 0 : i64, tpu.core_type = #tpu.core_type<tc>, window_params = [{transform_indices = @transform_0, window_bounds = array<i64: 4, 4, 128>}, {transform_indices = @transform_1, window_bounds = array<i64: 4, 4, 128>}, {pipeline_mode = #tpu.pipeline_mode<synchronous>, transform_indices = @transform_2, window_bounds = array<i64: 4, 4, 4>}, {pipeline_mode = #tpu.pipeline_mode<synchronous>, transform_indices = @transform_3, window_bounds = array<i64: 4, 4, 4>}, {transform_indices = @transform_4, window_bounds = array<i64: 4, 4, 128>}, {transform_indices = @transform_5, window_bounds = array<i64: 4, 4, 128>}]} {
    %c0 = arith.constant 0 : index
    %c0_0 = arith.constant 0 : index
    %c0_1 = arith.constant 0 : index
    %0 = vector.load %arg1[%c0, %c0_0, %c0_1] : memref<4x4x128xf32, #tpu.memory_space<vmem>>, vector<4x4x128xf32>
    %c0_2 = arith.constant 0 : index
    %c0_3 = arith.constant 0 : index
    %c0_4 = arith.constant 0 : index
    %1 = vector.load %arg2[%c0_2, %c0_3, %c0_4] : memref<4x4x128xf32, #tpu.memory_space<vmem>>, vector<4x4x128xf32>
    %c0_5 = arith.constant 0 : index
    %c0_6 = arith.constant 0 : index
    %c0_7 = arith.constant 0 : index
    %2 = vector.load %arg3[%c0_5, %c0_6, %c0_7] : memref<4x4x4xf32, #tpu.memory_space<vmem>>, vector<4x4x4xf32>
    %c0_8 = arith.constant 0 : index
    %c0_9 = arith.constant 0 : index
    %c0_10 = arith.constant 0 : index
    %3 = vector.load %arg4[%c0_8, %c0_9, %c0_10] : memref<4x4x4xf32, #tpu.memory_space<vmem>>, vector<4x4x4xf32>
    "tpu.trace_start"() <{level = 10 : i32, message = "moi,mij->moj"}> : () -> ()
    %cst = arith.constant dense<0.000000e+00> : vector<4x4x128xf32>
    %4 = tpu.matmul %2, %0, %cst {dimension_numbers = #tpu.dot_dimension_numbers<[2], [1], [1], [2], [0, 0, 0, 1, 1, 2], [0], [0]>} : vector<4x4x4xf32>, vector<4x4x128xf32>, vector<4x4x128xf32> -> vector<4x4x128xf32>
    %cst_11 = arith.constant dense<0.000000e+00> : vector<4x4x128xf32>
    %5 = tpu.matmul %3, %1, %cst_11 {dimension_numbers = #tpu.dot_dimension_numbers<[2], [1], [1], [2], [0, 0, 0, 1, 1, 2], [0], [0]>} : vector<4x4x4xf32>, vector<4x4x128xf32>, vector<4x4x128xf32> -> vector<4x4x128xf32>
    %cst_12 = arith.constant dense<0.000000e+00> : vector<4x4x128xf32>
    %6 = tpu.matmul %3, %0, %cst_12 {dimension_numbers = #tpu.dot_dimension_numbers<[2], [1], [1], [2], [0, 0, 0, 1, 1, 2], [0], [0]>} : vector<4x4x4xf32>, vector<4x4x128xf32>, vector<4x4x128xf32> -> vector<4x4x128xf32>
    %cst_13 = arith.constant dense<0.000000e+00> : vector<4x4x128xf32>
    %7 = tpu.matmul %2, %1, %cst_13 {dimension_numbers = #tpu.dot_dimension_numbers<[2], [1], [1], [2], [0, 0, 0, 1, 1, 2], [0], [0]>} : vector<4x4x4xf32>, vector<4x4x128xf32>, vector<4x4x128xf32> -> vector<4x4x128xf32>
    "tpu.trace_stop"() : () -> ()
    %8 = arith.subf %4, %5 : vector<4x4x128xf32>
    %c0_14 = arith.constant 0 : index
    %c0_15 = arith.constant 0 : index
    %c0_16 = arith.constant 0 : index
    %9 = vector.load %arg5[%c0_14, %c0_15, %c0_16] : memref<4x4x128xf32, #tpu.memory_space<vmem>>, vector<4x4x128xf32>
    tpu.vector_store %arg5[%c0_14, %c0_15, %c0_16], %8 {strides = array<i32>} : memref<4x4x128xf32, #tpu.memory_space<vmem>>, vector<4x4x128xf32>,
    %10 = arith.addf %6, %7 : vector<4x4x128xf32>
    %c0_17 = arith.constant 0 : index
    %c0_18 = arith.constant 0 : index
    %c0_19 = arith.constant 0 : index
    %11 = vector.load %arg6[%c0_17, %c0_18, %c0_19] : memref<4x4x128xf32, #tpu.memory_space<vmem>>, vector<4x4x128xf32>
    tpu.vector_store %arg6[%c0_17, %c0_18, %c0_19], %10 {strides = array<i32>} : memref<4x4x128xf32, #tpu.memory_space<vmem>>, vector<4x4x128xf32>,
    return
  }
  func.func @transform_0(%arg0: i32) -> (i32, i32, i32) {
    %c0_i32 = arith.constant 0 : i32
    %c0_i32_0 = arith.constant 0 : i32
    %c0_i32_1 = arith.constant 0 : i32
    return %c0_i32, %c0_i32_0, %arg0 : i32, i32, i32
  }
  func.func @transform_1(%arg0: i32) -> (i32, i32, i32) {
    %c0_i32 = arith.constant 0 : i32
    %c0_i32_0 = arith.constant 0 : i32
    %c0_i32_1 = arith.constant 0 : i32
    return %c0_i32, %c0_i32_0, %arg0 : i32, i32, i32
  }
  func.func @transform_2(%arg0: i32) -> (i32, i32, i32) {
    %c0_i32 = arith.constant 0 : i32
    %c0_i32_0 = arith.constant 0 : i32
    %c0_i32_1 = arith.constant 0 : i32
    %c0_i32_2 = arith.constant 0 : i32
    return %c0_i32, %c0_i32_0, %c0_i32_1 : i32, i32, i32
  }
  func.func @transform_3(%arg0: i32) -> (i32, i32, i32) {
    %c0_i32 = arith.constant 0 : i32
    %c0_i32_0 = arith.constant 0 : i32
    %c0_i32_1 = arith.constant 0 : i32
    %c0_i32_2 = arith.constant 0 : i32
    return %c0_i32, %c0_i32_0, %c0_i32_1 : i32, i32, i32
  }
  func.func @transform_4(%arg0: i32) -> (i32, i32, i32) {
    %c0_i32 = arith.constant 0 : i32
    %c0_i32_0 = arith.constant 0 : i32
    %c0_i32_1 = arith.constant 0 : i32
    return %c0_i32, %c0_i32_0, %arg0 : i32, i32, i32
  }
  func.func @transform_5(%arg0: i32) -> (i32, i32, i32) {
    %c0_i32 = arith.constant 0 : i32
    %c0_i32_0 = arith.constant 0 : i32
    %c0_i32_1 = arith.constant 0 : i32
    return %c0_i32, %c0_i32_0, %arg0 : i32, i32, i32
  }
}

module attributes {stable_mosaic.version = 11 : i64} {
  func.func @kernel(%arg0: i32, %arg1: i32, %arg2: memref<1x4x1024xf32, #tpu.memory_space<vmem>>, %arg3: memref<1x4x1024xf32, #tpu.memory_space<vmem>>, %arg4: memref<1x4x1024xf32, #tpu.memory_space<vmem>>, %arg5: memref<16x4xf32, #tpu.memory_space<vmem>>, %arg6: memref<16x1xf32, #tpu.memory_space<vmem>>, %arg7: memref<4x8xf32, #tpu.memory_space<vmem>>, %arg8: memref<4x1xf32, #tpu.memory_space<vmem>>, %arg9: memref<4x8xf32, #tpu.memory_space<vmem>>, %arg10: memref<4x1xf32, #tpu.memory_space<vmem>>, %arg11: memref<1x4x1024xf32, #tpu.memory_space<vmem>>, %arg12: memref<1x4x1024xf32, #tpu.memory_space<vmem>>) attributes {dimension_semantics = [#tpu.dimension_semantics<parallel>, #tpu.dimension_semantics<parallel>], iteration_bounds = array<i64: 2, 4>, scalar_prefetch = 0 : i64, scratch_operands = 0 : i64, tpu.core_type = #tpu.core_type<tc>, window_params = [{transform_indices = @transform_0, window_bounds = array<i64: 1, 4, 1024>}, {transform_indices = @transform_1, window_bounds = array<i64: 1, 4, 1024>}, {transform_indices = @transform_2, window_bounds = array<i64: 1, 4, 1024>}, {pipeline_mode = #tpu.pipeline_mode<synchronous>, transform_indices = @transform_3, window_bounds = array<i64: 16, 4>}, {pipeline_mode = #tpu.pipeline_mode<synchronous>, transform_indices = @transform_4, window_bounds = array<i64: 16, 1>}, {pipeline_mode = #tpu.pipeline_mode<synchronous>, transform_indices = @transform_5, window_bounds = array<i64: 4, 8>}, {pipeline_mode = #tpu.pipeline_mode<synchronous>, transform_indices = @transform_6, window_bounds = array<i64: 4, 1>}, {pipeline_mode = #tpu.pipeline_mode<synchronous>, transform_indices = @transform_7, window_bounds = array<i64: 4, 8>}, {pipeline_mode = #tpu.pipeline_mode<synchronous>, transform_indices = @transform_8, window_bounds = array<i64: 4, 1>}, {transform_indices = @transform_9, window_bounds = array<i64: 1, 4, 1024>}, {transform_indices = @transform_10, window_bounds = array<i64: 1, 4, 1024>}]} {
    %c0 = arith.constant 0 : index
    %c0_0 = arith.constant 0 : index
    %c0_1 = arith.constant 0 : index
    %0 = vector.load %arg2[%c0, %c0_0, %c0_1] : memref<1x4x1024xf32, #tpu.memory_space<vmem>>, vector<1x4x1024xf32>
    %1 = vector.shape_cast %0 : vector<1x4x1024xf32> to vector<4x1024xf32>
    %c0_2 = arith.constant 0 : index
    %c0_3 = arith.constant 0 : index
    %c0_4 = arith.constant 0 : index
    %2 = vector.load %arg3[%c0_2, %c0_3, %c0_4] : memref<1x4x1024xf32, #tpu.memory_space<vmem>>, vector<1x4x1024xf32>
    %3 = vector.shape_cast %2 : vector<1x4x1024xf32> to vector<4x1024xf32>
    %4 = arith.addf %1, %3 : vector<4x1024xf32>
    %c0_5 = arith.constant 0 : index
    %c0_6 = arith.constant 0 : index
    %c0_7 = arith.constant 0 : index
    %5 = vector.load %arg4[%c0_5, %c0_6, %c0_7] : memref<1x4x1024xf32, #tpu.memory_space<vmem>>, vector<1x4x1024xf32>
    %6 = vector.shape_cast %5 : vector<1x4x1024xf32> to vector<4x1024xf32>
    %7 = arith.addf %4, %6 : vector<4x1024xf32>
    %c0_8 = arith.constant 0 : index
    %c0_9 = arith.constant 0 : index
    %8 = vector.load %arg5[%c0_8, %c0_9] : memref<16x4xf32, #tpu.memory_space<vmem>>, vector<16x4xf32>
    %cst = arith.constant dense<0.000000e+00> : vector<16x1024xf32>
    %9 = tpu.matmul %8, %7, %cst {dimension_numbers = #tpu.dot_dimension_numbers<[1], [0], [0], [1], [0, 0, 1, 1], [], []>} : vector<16x4xf32>, vector<4x1024xf32>, vector<16x1024xf32> -> vector<16x1024xf32>
    %c0_10 = arith.constant 0 : index
    %c0_11 = arith.constant 0 : index
    %10 = vector.load %arg6[%c0_10, %c0_11] : memref<16x1xf32, #tpu.memory_space<vmem>>, vector<16x1xf32>
    %11 = vector.broadcast %10 : vector<16x1xf32> to vector<16x1024xf32>
    %12 = arith.addf %9, %11 : vector<16x1024xf32>
    %cst_12 = arith.constant 0.000000e+00 : f32
    %13 = vector.broadcast %cst_12 : f32 to vector<16x1024xf32>
    %14 = arith.maximumf %12, %13 : vector<16x1024xf32>
    %15 = vector.extract_strided_slice %14 {offsets = [0, 0], sizes = [8, 1024], strides = [1, 1]} : vector<16x1024xf32> to vector<8x1024xf32>
    %c0_13 = arith.constant 0 : index
    %c0_14 = arith.constant 0 : index
    %16 = vector.load %arg7[%c0_13, %c0_14] : memref<4x8xf32, #tpu.memory_space<vmem>>, vector<4x8xf32>
    %cst_15 = arith.constant dense<0.000000e+00> : vector<4x1024xf32>
    %17 = tpu.matmul %16, %15, %cst_15 {dimension_numbers = #tpu.dot_dimension_numbers<[1], [0], [0], [1], [0, 0, 1, 1], [], []>} : vector<4x8xf32>, vector<8x1024xf32>, vector<4x1024xf32> -> vector<4x1024xf32>
    %c0_16 = arith.constant 0 : index
    %c0_17 = arith.constant 0 : index
    %18 = vector.load %arg8[%c0_16, %c0_17] : memref<4x1xf32, #tpu.memory_space<vmem>>, vector<4x1xf32>
    %19 = vector.broadcast %18 : vector<4x1xf32> to vector<4x1024xf32>
    %20 = arith.addf %17, %19 : vector<4x1024xf32>
    %c0_18 = arith.constant 0 : index
    %c0_19 = arith.constant 0 : index
    %c0_20 = arith.constant 0 : index
    %21 = vector.load %arg11[%c0_18, %c0_19, %c0_20] : memref<1x4x1024xf32, #tpu.memory_space<vmem>>, vector<1x4x1024xf32>
    %22 = vector.shape_cast %21 : vector<1x4x1024xf32> to vector<4x1024xf32>
    %23 = vector.shape_cast %20 : vector<4x1024xf32> to vector<1x4x1024xf32>
    tpu.vector_store %arg11[%c0_18, %c0_19, %c0_20], %23 {strides = array<i32>} : memref<1x4x1024xf32, #tpu.memory_space<vmem>>, vector<1x4x1024xf32>,
    %24 = vector.extract_strided_slice %14 {offsets = [8, 0], sizes = [8, 1024], strides = [1, 1]} : vector<16x1024xf32> to vector<8x1024xf32>
    %c0_21 = arith.constant 0 : index
    %c0_22 = arith.constant 0 : index
    %25 = vector.load %arg9[%c0_21, %c0_22] : memref<4x8xf32, #tpu.memory_space<vmem>>, vector<4x8xf32>
    %cst_23 = arith.constant dense<0.000000e+00> : vector<4x1024xf32>
    %26 = tpu.matmul %25, %24, %cst_23 {dimension_numbers = #tpu.dot_dimension_numbers<[1], [0], [0], [1], [0, 0, 1, 1], [], []>} : vector<4x8xf32>, vector<8x1024xf32>, vector<4x1024xf32> -> vector<4x1024xf32>
    %c0_24 = arith.constant 0 : index
    %c0_25 = arith.constant 0 : index
    %27 = vector.load %arg10[%c0_24, %c0_25] : memref<4x1xf32, #tpu.memory_space<vmem>>, vector<4x1xf32>
    %28 = vector.broadcast %27 : vector<4x1xf32> to vector<4x1024xf32>
    %29 = arith.addf %26, %28 : vector<4x1024xf32>
    %c0_26 = arith.constant 0 : index
    %c0_27 = arith.constant 0 : index
    %c0_28 = arith.constant 0 : index
    %30 = vector.load %arg12[%c0_26, %c0_27, %c0_28] : memref<1x4x1024xf32, #tpu.memory_space<vmem>>, vector<1x4x1024xf32>
    %31 = vector.shape_cast %30 : vector<1x4x1024xf32> to vector<4x1024xf32>
    %32 = vector.shape_cast %29 : vector<4x1024xf32> to vector<1x4x1024xf32>
    tpu.vector_store %arg12[%c0_26, %c0_27, %c0_28], %32 {strides = array<i32>} : memref<1x4x1024xf32, #tpu.memory_space<vmem>>, vector<1x4x1024xf32>,
    return
  }
  func.func @transform_0(%arg0: i32, %arg1: i32) -> (i32, i32, i32) {
    %c0_i32 = arith.constant 0 : i32
    %c0_i32_0 = arith.constant 0 : i32
    return %arg0, %c0_i32, %arg1 : i32, i32, i32
  }
  func.func @transform_1(%arg0: i32, %arg1: i32) -> (i32, i32, i32) {
    %c0_i32 = arith.constant 0 : i32
    %c0_i32_0 = arith.constant 0 : i32
    return %arg0, %c0_i32, %arg1 : i32, i32, i32
  }
  func.func @transform_2(%arg0: i32, %arg1: i32) -> (i32, i32, i32) {
    %c0_i32 = arith.constant 0 : i32
    %c0_i32_0 = arith.constant 0 : i32
    return %arg0, %c0_i32, %arg1 : i32, i32, i32
  }
  func.func @transform_3(%arg0: i32, %arg1: i32) -> (i32, i32) {
    %c0_i32 = arith.constant 0 : i32
    %c0_i32_0 = arith.constant 0 : i32
    %c0_i32_1 = arith.constant 0 : i32
    return %c0_i32, %c0_i32_0 : i32, i32
  }
  func.func @transform_4(%arg0: i32, %arg1: i32) -> (i32, i32) {
    %c0_i32 = arith.constant 0 : i32
    %c0_i32_0 = arith.constant 0 : i32
    %c0_i32_1 = arith.constant 0 : i32
    return %c0_i32, %c0_i32_0 : i32, i32
  }
  func.func @transform_5(%arg0: i32, %arg1: i32) -> (i32, i32) {
    %c0_i32 = arith.constant 0 : i32
    %c0_i32_0 = arith.constant 0 : i32
    %c0_i32_1 = arith.constant 0 : i32
    return %c0_i32, %c0_i32_0 : i32, i32
  }
  func.func @transform_6(%arg0: i32, %arg1: i32) -> (i32, i32) {
    %c0_i32 = arith.constant 0 : i32
    %c0_i32_0 = arith.constant 0 : i32
    %c0_i32_1 = arith.constant 0 : i32
    return %c0_i32, %c0_i32_0 : i32, i32
  }
  func.func @transform_7(%arg0: i32, %arg1: i32) -> (i32, i32) {
    %c0_i32 = arith.constant 0 : i32
    %c0_i32_0 = arith.constant 0 : i32
    %c0_i32_1 = arith.constant 0 : i32
    return %c0_i32, %c0_i32_0 : i32, i32
  }
  func.func @transform_8(%arg0: i32, %arg1: i32) -> (i32, i32) {
    %c0_i32 = arith.constant 0 : i32
    %c0_i32_0 = arith.constant 0 : i32
    %c0_i32_1 = arith.constant 0 : i32
    return %c0_i32, %c0_i32_0 : i32, i32
  }
  func.func @transform_9(%arg0: i32, %arg1: i32) -> (i32, i32, i32) {
    %c0_i32 = arith.constant 0 : i32
    %c0_i32_0 = arith.constant 0 : i32
    return %arg0, %c0_i32, %arg1 : i32, i32, i32
  }
  func.func @transform_10(%arg0: i32, %arg1: i32) -> (i32, i32, i32) {
    %c0_i32 = arith.constant 0 : i32
    %c0_i32_0 = arith.constant 0 : i32
    return %arg0, %c0_i32, %arg1 : i32, i32, i32
  }
}

</mosaic_0001>

<bundles_post_ra>
// kernel: factorized_spectral_conv3d.6
= control target key start
LH: loop header
LB: loop body
LE: loop exit
PB: predicated region body
PF: predicated region fallthrough
CT: control target
= control target key end

     0   :  { %s1109_s18 = smov 0   ;;  %s1111_s19 = smov 0   ;;  %s1260_s0 = inlined_call_operand.vmem [shape: f32[4,4,512], index: 0, kind: input, shape index: {}]   ;;  %s1261_s1 = inlined_call_operand.vmem [shape: f32[4,4,512], index: 1, kind: input, shape index: {}]   ;;  %s1262_s2 = inlined_call_operand.vmem [shape: f32[4,4,4], index: 2, kind: input, shape index: {}]   ;;  %s1263_s3 = inlined_call_operand.vmem [shape: f32[4,4,4], index: 3, kind: input, shape index: {}]   ;;  %s1264_s4 = inlined_call_operand.vmem [shape: f32[4,4,512], index: 4, kind: output, shape index: {0}]   ;;  %s1265_s5 = inlined_call_operand.vmem [shape: f32[4,4,512], index: 5, kind: output, shape index: {1}]  }
   0x1   :  { %s1113_s20 = smov 0  }
   0x2 LB: > { %s1125_s21 = sadd.s32 4294967295, %s1077_s20   ;;  %s1128_s22 = sadd.s32 1, %s1077_s20   ;;  %s1077_s20 = sphi %s1113_s20, %s1270_s20   ;;  %s1073_s19 = sphi %s1111_s19, %s1269_s19   ;;  %s1069_s18 = sphi %s1109_s18, %s1268_s18  }
   0x3   : > { %s20_s23 = ssub.s32 %s1077_s20, %s1128_s22  ;;  %s23_s24 = sadd.s32 1, %s1073_s19 }
   0x4   : > { %p21_p0 = scmp.eq.s32.totalorder %s20_s23, 0  ;;  %p30_p1 = scmp.ne.s32.totalorder %s1073_s19, %s1069_s18 }
   0x5   : > { %p31_p2 = scmp.eq.s32.totalorder %s1077_s20, 0  ;;  %p128_p3 = scmp.eq.s32.totalorder %s1125_s21, 3 }
   0x6   : > { %s1138_s25 = scalar_select %p21_p0, %s1073_s19, %s23_s24  }
   0x7   : > { %p1140_p4 = por %p31_p2, %p30_p1  ;;  %p1144_p5 = por %p128_p3, %p30_p1 }
   0x8   : > { %p983_p6 = scmp.ge.s32.totalorder %s1077_s20, 4 }
   0xa   : > { %182 = sbr.rel (%p983_p6) target bundleno = 31 (0x1f), region = 24 }
   0xf   : > { %185 = sbr.rel (!%p1140_p4) target bundleno = 23 (0x17), region = 28  ;;  %s187_s28 = sand.u32 (%p1140_p4), 1, %s1073_s19  }
  0x10   : > { %s985_s29 = sshll.u32 (%p1140_p4), %s1077_s20, 2  ;;  %s984_s30 = sshll.u32 (%p1140_p4), %s187_s28, 4 }
  0x11   : > { %s191_s8 = scalar_lea.vmem (%p1140_p4), %s1260_s0, %s985_s29  ;;  %s189_s9 = scalar_lea.vmem (%p1140_p4), [#allocation2], %s984_s30 }
  0x12   : > { %v208_v0 = vld [vmem:[%s191_s8] sm:$0xf] (%p1140_p4)  ;;  %v210_v1 = vld [vmem:[%s191_s8 + $0x10] sm:$0xf] (%p1140_p4) }
  0x13   : > { %209 = vst [vmem:[%s189_s9] sm:$0xf] (%p1140_p4), %v208_v0  ;;  %v212_v2 = vld [vmem:[%s191_s8 + $0x20] sm:$0xf] (%p1140_p4)  ;;  %v214_v3 = vld [vmem:[%s191_s8 + $0x30] sm:$0xf] (%p1140_p4) }
  0x14   : > { %211 = vst [vmem:[%s189_s9 + $0x4] sm:$0xf] %v210_v1 }
  0x15   : > { %213 = vst [vmem:[%s189_s9 + $0x8] sm:$0xf] %v212_v2 }
  0x16   : > { %215 = vst [vmem:[%s189_s9 + $0xc] sm:$0xf] %v214_v3 }
  0x17 PF: > { %247 = sbr.rel (!%p1140_p4) target bundleno = 31 (0x1f), region = 69  ;;  %s249_s10 = sand.u32 (%p1140_p4), 1, %s1073_s19  }
  0x18   : > { %s987_s11 = sshll.u32 (%p1140_p4), %s1077_s20, 2  ;;  %s986_s12 = sshll.u32 (%p1140_p4), %s249_s10, 4 }
  0x19   : > { %s253_s15 = scalar_lea.vmem (%p1140_p4), %s1261_s1, %s987_s11  ;;  %s251_s16 = scalar_lea.vmem (%p1140_p4), [#allocation3], %s986_s12 }
  0x1a   : > { %v270_v4 = vld [vmem:[%s253_s15] sm:$0xf] (%p1140_p4)  ;;  %v272_v5 = vld [vmem:[%s253_s15 + $0x10] sm:$0xf] (%p1140_p4) }
  0x1b   : > { %271 = vst [vmem:[%s251_s16] sm:$0xf] (%p1140_p4), %v270_v4  ;;  %v274_v6 = vld [vmem:[%s253_s15 + $0x20] sm:$0xf] (%p1140_p4)  ;;  %v276_v7 = vld [vmem:[%s253_s15 + $0x30] sm:$0xf] (%p1140_p4) }
  0x1c   : > { %273 = vst [vmem:[%s251_s16 + $0x4] sm:$0xf] %v272_v5 }
  0x1d   : > { %275 = vst [vmem:[%s251_s16 + $0x8] sm:$0xf] %v274_v6 }
  0x1e   : > { %277 = vst [vmem:[%s251_s16 + $0xc] sm:$0xf] %v276_v7 }
  0x1f PF: > { %p988_p7 = scmp.ge.s32.totalorder %s1077_s20, 1  ;;  %p308_p8 = scmp.lt.s32.totalorder %s1077_s20, 5 }
  0x21   : > { %p309_p9 = pnand %p988_p7, %p308_p8 }
  0x22   : > { %s315_s17 = sand.u32 (!%p309_p9), 1, %s1069_s18  }
  0x23   : > { %312 = sbr.rel (%p309_p9) target bundleno = 213 (0xd5), region = 110  ;;  %s1166_s23 = sshll.u32 (!%p309_p9), %s315_s17, 4 }
  0x24   : > { %s317_s30 = scalar_lea.vmem (!%p309_p9), [#allocation2], %s1166_s23  ;;  %s324_s8 = scalar_lea.vmem (!%p309_p9), [#allocation3], %s1166_s23 }
  0x25   : > { %s1227_s17 = scalar_lea.vmem (!%p309_p9), [#allocation4], %s1166_s23  ;;  %s355_s24 = scalar_lea.vmem (!%p309_p9), [#allocation5], %s1166_s23 }
  0x28   : > { %vm376_vm0 = vcmask 1043456   ;;  %v364_v8 = vld [vmem:[%s1262_s2] sm:$0xf]  ;;  %vm372_vm1 = vcmask 31744   ;;  %v365_v9 = vld [vmem:[%s1262_s2 + $0x4] sm:$0xf] }
  0x29   : > { %v356_v10 = vld [vmem:[%s317_s30] sm:$0xf]  ;;  %v357_v11 = vld [vmem:[%s317_s30 + $0x4] sm:$0xf]  ;;  %v358_v12 = vld [vmem:[%s317_s30 + $0x8] sm:$0xf] }
  0x2a   : > { %993 = vmatpush.msk.msra.mxu0 %vm376_vm0, %v356_v10  ;;  %995 = vmatpush.msk.msra.mxu1 %vm376_vm0, %v357_v11  ;;  %v359_v13 = vld [vmem:[%s317_s30 + $0xc] sm:$0xf]  ;;  %v366_v14 = vld [vmem:[%s1262_s2 + $0x8] sm:$0xf]  ;;  %v360_v18 = vld [vmem:[%s324_s8] sm:$0xf] }
  0x2b   : > { %v367_v15 = vld [vmem:[%s1262_s2 + $0xc] sm:$0xf]  ;;  %997 = vmatpush.msk.msra.mxu2 %vm376_vm0, %v358_v12  ;;  %999 = vmatpush.msk.msra.mxu3 %vm376_vm0, %v359_v13  ;;  %v362_v16 = vld [vmem:[%s324_s8 + $0x8] sm:$0xf]  ;;  %v361_v19 = vld [vmem:[%s324_s8 + $0x4] sm:$0xf] }
  0x2c   : > { %v363_v17 = vld [vmem:[%s324_s8 + $0xc] sm:$0xf]  ;;  %994 = vmatmul.msk.f32.vlgmr.msra.gmra.mxu0 %vm372_vm1, %v364_v8  ;;  %996 = vmatmul.msk.f32.vlgmr.msra.gmra.mxu1 %vm372_vm1, %v365_v9  ;;  %v368_v20 = vld [vmem:[%s1263_s3] sm:$0xf]  ;;  %v369_v21 = vld [vmem:[%s1263_s3 + $0x4] sm:$0xf] }
  0x2d   : > { %998 = vmatmul.msk.f32.vlgmr.msra.gmra.mxu2 %vm372_vm1, %v366_v14  ;;  %1000 = vmatmul.msk.f32.vlgmr.msra.gmra.mxu3 %vm372_vm1, %v367_v15  ;;  %v370_v22 = vld [vmem:[%s1263_s3 + $0x8] sm:$0xf]  ;;  %v371_v23 = vld [vmem:[%s1263_s3 + $0xc] sm:$0xf]  ;;  %s1027_s26 = sshll.u32 (%p1144_p5), %s1125_s21, 2 }
  0x2e   : > { %1005 = vmatpush.msk.msrb.mxu2 %vm376_vm0, %v362_v16  ;;  %1007 = vmatpush.msk.msrb.mxu3 %vm376_vm0, %v363_v17  ;;  %s766_s29 = scalar_lea.vmem (%p1144_p5), %s1264_s4, %s1027_s26 }
  0x2f   : > { %1001 = vmatpush.msk.msrb.mxu0 %vm376_vm0, %v360_v18  ;;  %1003 = vmatpush.msk.msrb.mxu1 %vm376_vm0, %v361_v19 }
  0x30   : > { %1013 = vmatpush.msk.msra.mxu2 %vm376_vm0, %v362_v16  ;;  %1015 = vmatpush.msk.msra.mxu3 %vm376_vm0, %v363_v17 }
  0x31   : > { %1009 = vmatpush.msk.msra.mxu0 %vm376_vm0, %v360_v18  ;;  %1011 = vmatpush.msk.msra.mxu1 %vm376_vm0, %v361_v19 }
  0x34   : > { %1002 = vmatmul.msk.f32.vlgmr.msrb.gmra.mxu0 %vm372_vm1, %v368_v20  ;;  %1004 = vmatmul.msk.f32.vlgmr.msrb.gmra.mxu1 %vm372_vm1, %v369_v21 }
  0x35   : > { %1006 = vmatmul.msk.f32.vlgmr.msrb.gmra.mxu2 %vm372_vm1, %v370_v22  ;;  %1008 = vmatmul.msk.f32.vlgmr.msrb.gmra.mxu3 %vm372_vm1, %v371_v23 }
  0x36   : > { %1021 = vmatpush.msk.msrb.mxu2 %vm376_vm0, %v358_v12  ;;  %1023 = vmatpush.msk.msrb.mxu3 %vm376_vm0, %v359_v13 }
  0x37   : > { %1017 = vmatpush.msk.msrb.mxu0 %vm376_vm0, %v356_v10  ;;  %1019 = vmatpush.msk.msrb.mxu1 %vm376_vm0, %v357_v11 }
  0x3c   : > { %1010 = vmatmul.msk.f32.vlgmr.msra.gmra.mxu0 %vm372_vm1, %v364_v8  ;;  %1012 = vmatmul.msk.f32.vlgmr.msra.gmra.mxu1 %vm372_vm1, %v365_v9 }
  0x3d   : > { %1014 = vmatmul.msk.f32.vlgmr.msra.gmra.mxu2 %vm372_vm1, %v366_v14  ;;  %1016 = vmatmul.msk.f32.vlgmr.msra.gmra.mxu3 %vm372_vm1, %v367_v15 }
  0x44   : > { %1018 = vmatmul.msk.f32.vlgmr.msrb.gmra.mxu0 %vm372_vm1, %v368_v20  ;;  %1020 = vmatmul.msk.f32.vlgmr.msrb.gmra.mxu1 %vm372_vm1, %v369_v21 }
  0x45   : > { %1022 = vmatmul.msk.f32.vlgmr.msrb.gmra.mxu2 %vm372_vm1, %v370_v22  ;;  %1024 = vmatmul.msk.f32.vlgmr.msrb.gmra.mxu3 %vm372_vm1, %v371_v23 }
  0xa9   : > { %v397_v24 = vpop.f32.mrf.mxu0  ;;  %v423_v25 = vpop.f32.mrf.mxu1 }
  0xb0   : > { %v449_v26 = vpop.f32.mrf.mxu2  ;;  %v475_v27 = vpop.f32.mrf.mxu3 }
  0xb1   : > { %v501_v28 = vpop.f32.mrf.mxu0  ;;  %v527_v29 = vpop.f32.mrf.mxu1 }
  0xb2   : > { %v662_v30 = vsub.f32 %v397_v24, %v501_v28  ;;  %v663_v31 = vsub.f32 %v423_v25, %v527_v29 }
  0xb4   : > { %666 = vst [vmem:[%s1227_s17] sm:$0xf] %v662_v30 }
  0xb5   : > { %667 = vst [vmem:[%s1227_s17 + $0x4] sm:$0xf] %v663_v31 }
  0xb8   : > { %v553_v32 = vpop.f32.mrf.mxu2  ;;  %v579_v33 = vpop.f32.mrf.mxu3 }
  0xb9   : > { %v664_v34 = vsub.f32 %v449_v26, %v553_v32  ;;  %v665_v35 = vsub.f32 %v475_v27, %v579_v33  ;;  %v599_v36 = vpop.f32.mrf.mxu0  ;;  %v619_v37 = vpop.f32.mrf.mxu1 }
  0xbb   : > { %668 = vst [vmem:[%s1227_s17 + $0x8] sm:$0xf] %v664_v34  ;;  %v783_v48 = vld [vmem:[%s1227_s17] sm:$0xf] (%p1144_p5) }
  0xbc   : > { %669 = vst [vmem:[%s1227_s17 + $0xc] sm:$0xf] %v665_v35  ;;  %v785_v49 = vld [vmem:[%s1227_s17 + $0x4] sm:$0xf] (%p1144_p5) }
  0xbd   : > { %784 = vst [vmem:[%s766_s29] sm:$0xf] (%p1144_p5), %v783_v48 }
  0xbe   : > { %786 = vst [vmem:[%s766_s29 + $0x10] sm:$0xf] (%p1144_p5), %v785_v49 }
  0xc0   : > { %v639_v38 = vpop.f32.mrf.mxu2  ;;  %v659_v39 = vpop.f32.mrf.mxu3 }
  0xc1   : > { %v687_v40 = vpop.f32.mrf.mxu0  ;;  %v707_v41 = vpop.f32.mrf.mxu1 }
  0xc2   : > { %v688_v42 = vadd.f32 %v687_v40, %v599_v36  ;;  %v708_v43 = vadd.f32 %v707_v41, %v619_v37  ;;  %v787_v50 = vld [vmem:[%s1227_s17 + $0x8] sm:$0xf] (%p1144_p5) }
  0xc3   : > { %v789_v51 = vld [vmem:[%s1227_s17 + $0xc] sm:$0xf] (%p1144_p5)  ;;  %788 = vst [vmem:[%s766_s29 + $0x20] sm:$0xf] (%p1144_p5), %v787_v50 }
  0xc4   : > { %750 = vst [vmem:[%s355_s24] sm:$0xf] %v688_v42 }
  0xc5   : > { %751 = vst [vmem:[%s355_s24 + $0x4] sm:$0xf] %v708_v43 }
  0xc6   : > { %790 = vst [vmem:[%s766_s29 + $0x30] sm:$0xf] (%p1144_p5), %v789_v51 }
  0xc8   : > { %v727_v44 = vpop.f32.mrf.mxu2  ;;  %v747_v45 = vpop.f32.mrf.mxu3  ;;  %764 = sbr.rel (!%p1144_p5) target bundleno = 205 (0xcd), region = 122 }
  0xc9   : > { %v728_v46 = vadd.f32 %v727_v44, %v639_v38  ;;  %v748_v47 = vadd.f32 %v747_v45, %v659_v39 }
  0xcb   : > { %752 = vst [vmem:[%s355_s24 + $0x8] sm:$0xf] %v728_v46 }
  0xcc   : > { %753 = vst [vmem:[%s355_s24 + $0xc] sm:$0xf] %v748_v47 }
  0xcd PF: > { %822 = sbr.rel (!%p1144_p5) target bundleno = 213 (0xd5), region = 163  ;;  %s1028_s30 = sshll.u32 (%p1144_p5), %s1125_s21, 2  ;;  %v841_v52 = vld [vmem:[%s355_s24] sm:$0xf] (%p1144_p5)  ;;  %v843_v53 = vld [vmem:[%s355_s24 + $0x4] sm:$0xf] (%p1144_p5) }
  0xce   : > { %s824_s6 = scalar_lea.vmem (%p1144_p5), %s1265_s5, %s1028_s30 }
  0xcf   : > { %842 = vst [vmem:[%s824_s6] sm:$0xf] (%p1144_p5), %v841_v52 }
  0xd0   : > { %844 = vst [vmem:[%s824_s6 + $0x10] sm:$0xf] (%p1144_p5), %v843_v53 }
  0xd2   : > { %v845_v54 = vld [vmem:[%s355_s24 + $0x8] sm:$0xf] }
  0xd3   : > { %v847_v55 = vld [vmem:[%s355_s24 + $0xc] sm:$0xf]  ;;  %846 = vst [vmem:[%s824_s6 + $0x20] sm:$0xf] %v845_v54 }
  0xd4   : > { %848 = vst [vmem:[%s824_s6 + $0x30] sm:$0xf] %v847_v55 }
  0xd5 PF: > { %p13_p10 = scmp.ge.s32.totalorder %s1128_s22, 6   ;;  %s1268_s18 = smov %s1073_s19 }
  0xd6   : > { %s1269_s19 = smov %s1138_s25  ;;  %s1270_s20 = smov %s1128_s22 }
  0xd7   :  { %15 = sbr.rel (!%p13_p10) target bundleno = 2 (0x2), region = 255 }

// kernel: reverse.11
= control target key start
LH: loop header
LB: loop body
LE: loop exit
PB: predicated region body
PF: predicated region fallthrough
CT: control target
= control target key end

     0   :  { %v2_v0 = vlaneseq  ;;  %s3068_s0 = inlined_call_operand.vmem [shape: f32[2,4,16,16,7], index: 0, kind: input, shape index: {}]   ;;  %s3069_s1 = inlined_call_operand.vmem [shape: f32[2,4,16,16,7], index: 1, kind: output, shape index: {}]  }
   0x2   :  { %v2501_v1 = vsub.s32 6, %v2_v0 }
   0x4   :  { %4 = vset.pattern.permute.xlu0 %v2501_v1 }
   0x5   :  { %s2504_s6 = smov 0   ;;  %s2506_s7 = smov 0  }
   0x6   :  { %s2508_s8 = smov 0  }
   0x7 LB: > { %s2167_s9 = sadd.s32 4294967295, %s2489_s8   ;;  %s35_s10 = sadd.s32 1, %s2485_s7  ;;  %s2489_s8 = sphi %s2508_s8, %s10_s8   ;;  %s2485_s7 = sphi %s2506_s7, %s3071_s7   ;;  %s2481_s6 = sphi %s2504_s6, %s3070_s6  }
   0x8   : > { %p37_p0 = scmp.ge.s32.totalorder %s35_s10, 2  ;;  %p2169_p1 = scmp.ge.s32.totalorder %s2489_s8, 2 }
   0x9   : > { %s59_s11 = sand.u32 (!%p2169_p1), 1, %s2489_s8   ;;  %s2438_s12 = sshll.u32 (!%p2169_p1), %s2485_s7, 7 }
   0xa   : > { %s3073_s10 = smov (%p37_p0, %s35_s10), 0  ;;  %57 = sbr.rel (%p2169_p1) target bundleno = 144 (0x90), region = 16 }
   0xb   : > { %s2170_s13 = sshll.u32 (!%p2169_p1), %s59_s11, 10  ;;  %s2529_s16 = scalar_lea.vmem (!%p2169_p1), %s3068_s0, %s2438_s12 }
   0xc   : > { %s2534_s17 = scalar_lea.vmem (!%p2169_p1), [#allocation0], %s2170_s13 }
   0xf   : > { %v358_v2 = vld [vmem:[%s2529_s16] sm:$0xff]  ;;  %v360_v3 = vld [vmem:[%s2529_s16 + $0x8] sm:$0xff]  ;;  %v362_v4 = vld [vmem:[%s2529_s16 + $0x10] sm:$0xff] }
  0x10   : > { %359 = vst [vmem:[%s2534_s17] sm:$0xff] %v358_v2  ;;  %v364_v5 = vld [vmem:[%s2529_s16 + $0x18] sm:$0xff]  ;;  %v366_v6 = vld [vmem:[%s2529_s16 + $0x20] sm:$0xff]  ;;  %v368_v7 = vld [vmem:[%s2529_s16 + $0x28] sm:$0xff] }
  0x11   : > { %361 = vst [vmem:[%s2534_s17 + $0x8] sm:$0xff] %v360_v3  ;;  %v370_v8 = vld [vmem:[%s2529_s16 + $0x30] sm:$0xff]  ;;  %v372_v9 = vld [vmem:[%s2529_s16 + $0x38] sm:$0xff]  ;;  %v374_v10 = vld [vmem:[%s2529_s16 + $0x40] sm:$0xff] }
  0x12   : > { %363 = vst [vmem:[%s2534_s17 + $0x10] sm:$0xff] %v362_v4  ;;  %v376_v11 = vld [vmem:[%s2529_s16 + $0x48] sm:$0xff]  ;;  %v378_v12 = vld [vmem:[%s2529_s16 + $0x50] sm:$0xff]  ;;  %v380_v13 = vld [vmem:[%s2529_s16 + $0x58] sm:$0xff] }
  0x13   : > { %365 = vst [vmem:[%s2534_s17 + $0x18] sm:$0xff] %v364_v5  ;;  %v382_v14 = vld [vmem:[%s2529_s16 + $0x60] sm:$0xff]  ;;  %v384_v15 = vld [vmem:[%s2529_s16 + $0x68] sm:$0xff]  ;;  %v386_v16 = vld [vmem:[%s2529_s16 + $0x70] sm:$0xff] }
  0x14   : > { %367 = vst [vmem:[%s2534_s17 + $0x20] sm:$0xff] %v366_v6  ;;  %v388_v17 = vld [vmem:[%s2529_s16 + $0x78] sm:$0xff]  ;;  %v390_v18 = vld [vmem:[%s2529_s16 + $0x100] sm:$0xff]  ;;  %v392_v19 = vld [vmem:[%s2529_s16 + $0x108] sm:$0xff] }
  0x15   : > { %369 = vst [vmem:[%s2534_s17 + $0x28] sm:$0xff] %v368_v7  ;;  %v394_v20 = vld [vmem:[%s2529_s16 + $0x110] sm:$0xff]  ;;  %v396_v21 = vld [vmem:[%s2529_s16 + $0x118] sm:$0xff]  ;;  %v398_v22 = vld [vmem:[%s2529_s16 + $0x120] sm:$0xff] }
  0x16   : > { %371 = vst [vmem:[%s2534_s17 + $0x30] sm:$0xff] %v370_v8  ;;  %v400_v23 = vld [vmem:[%s2529_s16 + $0x128] sm:$0xff]  ;;  %v402_v24 = vld [vmem:[%s2529_s16 + $0x130] sm:$0xff]  ;;  %v404_v25 = vld [vmem:[%s2529_s16 + $0x138] sm:$0xff] }
  0x17   : > { %373 = vst [vmem:[%s2534_s17 + $0x38] sm:$0xff] %v372_v9  ;;  %v406_v26 = vld [vmem:[%s2529_s16 + $0x140] sm:$0xff]  ;;  %v408_v27 = vld [vmem:[%s2529_s16 + $0x148] sm:$0xff]  ;;  %v410_v28 = vld [vmem:[%s2529_s16 + $0x150] sm:$0xff] }
  0x18   : > { %375 = vst [vmem:[%s2534_s17 + $0x40] sm:$0xff] %v374_v10  ;;  %v412_v29 = vld [vmem:[%s2529_s16 + $0x158] sm:$0xff]  ;;  %v414_v30 = vld [vmem:[%s2529_s16 + $0x160] sm:$0xff]  ;;  %v416_v31 = vld [vmem:[%s2529_s16 + $0x168] sm:$0xff] }
  0x19   : > { %377 = vst [vmem:[%s2534_s17 + $0x48] sm:$0xff] %v376_v11  ;;  %v418_v32 = vld [vmem:[%s2529_s16 + $0x170] sm:$0xff]  ;;  %v420_v33 = vld [vmem:[%s2529_s16 + $0x178] sm:$0xff]  ;;  %v422_v34 = vld [vmem:[%s2529_s16 + $0x200] sm:$0xff] }
  0x1a   : > { %379 = vst [vmem:[%s2534_s17 + $0x50] sm:$0xff] %v378_v12  ;;  %v424_v35 = vld [vmem:[%s2529_s16 + $0x208] sm:$0xff]  ;;  %v426_v36 = vld [vmem:[%s2529_s16 + $0x210] sm:$0xff]  ;;  %v428_v37 = vld [vmem:[%s2529_s16 + $0x218] sm:$0xff] }
  0x1b   : > { %381 = vst [vmem:[%s2534_s17 + $0x58] sm:$0xff] %v380_v13  ;;  %v430_v38 = vld [vmem:[%s2529_s16 + $0x220] sm:$0xff]  ;;  %v432_v39 = vld [vmem:[%s2529_s16 + $0x228] sm:$0xff]  ;;  %v434_v40 = vld [vmem:[%s2529_s16 + $0x230] sm:$0xff] }
  0x1c   : > { %383 = vst [vmem:[%s2534_s17 + $0x60] sm:$0xff] %v382_v14  ;;  %v436_v41 = vld [vmem:[%s2529_s16 + $0x238] sm:$0xff]  ;;  %v438_v42 = vld [vmem:[%s2529_s16 + $0x240] sm:$0xff]  ;;  %v440_v43 = vld [vmem:[%s2529_s16 + $0x248] sm:$0xff] }
  0x1d   : > { %385 = vst [vmem:[%s2534_s17 + $0x68] sm:$0xff] %v384_v15  ;;  %v442_v44 = vld [vmem:[%s2529_s16 + $0x250] sm:$0xff]  ;;  %v444_v45 = vld [vmem:[%s2529_s16 + $0x258] sm:$0xff]  ;;  %v446_v46 = vld [vmem:[%s2529_s16 + $0x260] sm:$0xff] }
  0x1e   : > { %387 = vst [vmem:[%s2534_s17 + $0x70] sm:$0xff] %v386_v16  ;;  %v448_v47 = vld [vmem:[%s2529_s16 + $0x268] sm:$0xff]  ;;  %v450_v48 = vld [vmem:[%s2529_s16 + $0x270] sm:$0xff]  ;;  %v452_v49 = vld [vmem:[%s2529_s16 + $0x278] sm:$0xff] }
  0x1f   : > { %389 = vst [vmem:[%s2534_s17 + $0x78] sm:$0xff] %v388_v17  ;;  %v454_v50 = vld [vmem:[%s2529_s16 + $0x300] sm:$0xff]  ;;  %v456_v51 = vld [vmem:[%s2529_s16 + $0x308] sm:$0xff]  ;;  %v458_v52 = vld [vmem:[%s2529_s16 + $0x310] sm:$0xff] }
  0x20   : > { %391 = vst [vmem:[%s2534_s17 + $0x80] sm:$0xff] %v390_v18  ;;  %v460_v53 = vld [vmem:[%s2529_s16 + $0x318] sm:$0xff]  ;;  %v462_v54 = vld [vmem:[%s2529_s16 + $0x320] sm:$0xff]  ;;  %v464_v55 = vld [vmem:[%s2529_s16 + $0x328] sm:$0xff] }
  0x21   : > { %393 = vst [vmem:[%s2534_s17 + $0x88] sm:$0xff] %v392_v19  ;;  %v466_v56 = vld [vmem:[%s2529_s16 + $0x330] sm:$0xff]  ;;  %v468_v57 = vld [vmem:[%s2529_s16 + $0x338] sm:$0xff]  ;;  %v470_v58 = vld [vmem:[%s2529_s16 + $0x340] sm:$0xff] }
  0x22   : > { %395 = vst [vmem:[%s2534_s17 + $0x90] sm:$0xff] %v394_v20  ;;  %v472_v59 = vld [vmem:[%s2529_s16 + $0x348] sm:$0xff]  ;;  %v474_v60 = vld [vmem:[%s2529_s16 + $0x350] sm:$0xff]  ;;  %v476_v61 = vld [vmem:[%s2529_s16 + $0x358] sm:$0xff] }
  0x23   : > { %397 = vst [vmem:[%s2534_s17 + $0x98] sm:$0xff] %v396_v21  ;;  %v478_v62 = vld [vmem:[%s2529_s16 + $0x360] sm:$0xff]  ;;  %v480_v63 = vld [vmem:[%s2529_s16 + $0x368] sm:$0xff]  ;;  %v482_v0 = vld [vmem:[%s2529_s16 + $0x370] sm:$0xff] }
  0x24   : > { %399 = vst [vmem:[%s2534_s17 + $0xa0] sm:$0xff] %v398_v22  ;;  %v484_v2 = vld [vmem:[%s2529_s16 + $0x378] sm:$0xff]  ;;  %v486_v3 = vld [vmem:[%s2529_s16 + $0x400] sm:$0xff]  ;;  %v488_v4 = vld [vmem:[%s2529_s16 + $0x408] sm:$0xff] }
  0x25   : > { %401 = vst [vmem:[%s2534_s17 + $0xa8] sm:$0xff] %v400_v23  ;;  %v490_v5 = vld [vmem:[%s2529_s16 + $0x410] sm:$0xff]  ;;  %v492_v6 = vld [vmem:[%s2529_s16 + $0x418] sm:$0xff]  ;;  %v494_v7 = vld [vmem:[%s2529_s16 + $0x420] sm:$0xff] }
  0x26   : > { %403 = vst [vmem:[%s2534_s17 + $0xb0] sm:$0xff] %v402_v24  ;;  %v496_v8 = vld [vmem:[%s2529_s16 + $0x428] sm:$0xff]  ;;  %v498_v9 = vld [vmem:[%s2529_s16 + $0x430] sm:$0xff]  ;;  %v500_v10 = vld [vmem:[%s2529_s16 + $0x438] sm:$0xff] }
  0x27   : > { %405 = vst [vmem:[%s2534_s17 + $0xb8] sm:$0xff] %v404_v25  ;;  %v502_v11 = vld [vmem:[%s2529_s16 + $0x440] sm:$0xff]  ;;  %v504_v12 = vld [vmem:[%s2529_s16 + $0x448] sm:$0xff]  ;;  %v506_v13 = vld [vmem:[%s2529_s16 + $0x450] sm:$0xff] }
  0x28   : > { %407 = vst [vmem:[%s2534_s17 + $0xc0] sm:$0xff] %v406_v26  ;;  %v508_v14 = vld [vmem:[%s2529_s16 + $0x458] sm:$0xff]  ;;  %v510_v15 = vld [vmem:[%s2529_s16 + $0x460] sm:$0xff]  ;;  %v512_v16 = vld [vmem:[%s2529_s16 + $0x468] sm:$0xff] }
  0x29   : > { %409 = vst [vmem:[%s2534_s17 + $0xc8] sm:$0xff] %v408_v27  ;;  %v514_v17 = vld [vmem:[%s2529_s16 + $0x470] sm:$0xff]  ;;  %v516_v18 = vld [vmem:[%s2529_s16 + $0x478] sm:$0xff]  ;;  %v518_v19 = vld [vmem:[%s2529_s16 + $0x500] sm:$0xff] }
  0x2a   : > { %411 = vst [vmem:[%s2534_s17 + $0xd0] sm:$0xff] %v410_v28  ;;  %v520_v20 = vld [vmem:[%s2529_s16 + $0x508] sm:$0xff]  ;;  %v522_v21 = vld [vmem:[%s2529_s16 + $0x510] sm:$0xff]  ;;  %v524_v22 = vld [vmem:[%s2529_s16 + $0x518] sm:$0xff] }
  0x2b   : > { %413 = vst [vmem:[%s2534_s17 + $0xd8] sm:$0xff] %v412_v29  ;;  %v526_v23 = vld [vmem:[%s2529_s16 + $0x520] sm:$0xff]  ;;  %v528_v24 = vld [vmem:[%s2529_s16 + $0x528] sm:$0xff]  ;;  %v530_v25 = vld [vmem:[%s2529_s16 + $0x530] sm:$0xff] }
  0x2c   : > { %415 = vst [vmem:[%s2534_s17 + $0xe0] sm:$0xff] %v414_v30  ;;  %v532_v26 = vld [vmem:[%s2529_s16 + $0x538] sm:$0xff]  ;;  %v534_v27 = vld [vmem:[%s2529_s16 + $0x540] sm:$0xff]  ;;  %v536_v28 = vld [vmem:[%s2529_s16 + $0x548] sm:$0xff] }
  0x2d   : > { %417 = vst [vmem:[%s2534_s17 + $0xe8] sm:$0xff] %v416_v31  ;;  %v538_v29 = vld [vmem:[%s2529_s16 + $0x550] sm:$0xff]  ;;  %v540_v30 = vld [vmem:[%s2529_s16 + $0x558] sm:$0xff]  ;;  %v542_v31 = vld [vmem:[%s2529_s16 + $0x560] sm:$0xff] }
  0x2e   : > { %419 = vst [vmem:[%s2534_s17 + $0xf0] sm:$0xff] %v418_v32  ;;  %v544_v32 = vld [vmem:[%s2529_s16 + $0x568] sm:$0xff] }
  0x2f   : > { %421 = vst [vmem:[%s2534_s17 + $0xf8] sm:$0xff] %v420_v33  ;;  %v546_v33 = vld [vmem:[%s2529_s16 + $0x570] sm:$0xff] }
  0x30   : > { %423 = vst [vmem:[%s2534_s17 + $0x100] sm:$0xff] %v422_v34  ;;  %v548_v34 = vld [vmem:[%s2529_s16 + $0x578] sm:$0xff] }
  0x31   : > { %425 = vst [vmem:[%s2534_s17 + $0x108] sm:$0xff] %v424_v35  ;;  %v550_v35 = vld [vmem:[%s2529_s16 + $0x600] sm:$0xff] }
  0x32   : > { %427 = vst [vmem:[%s2534_s17 + $0x110] sm:$0xff] %v426_v36  ;;  %v552_v36 = vld [vmem:[%s2529_s16 + $0x608] sm:$0xff] }
  0x33   : > { %429 = vst [vmem:[%s2534_s17 + $0x118] sm:$0xff] %v428_v37  ;;  %v554_v37 = vld [vmem:[%s2529_s16 + $0x610] sm:$0xff] }
  0x34   : > { %431 = vst [vmem:[%s2534_s17 + $0x120] sm:$0xff] %v430_v38  ;;  %v556_v38 = vld [vmem:[%s2529_s16 + $0x618] sm:$0xff] }
  0x35   : > { %433 = vst [vmem:[%s2534_s17 + $0x128] sm:$0xff] %v432_v39  ;;  %v558_v39 = vld [vmem:[%s2529_s16 + $0x620] sm:$0xff] }
  0x36   : > { %435 = vst [vmem:[%s2534_s17 + $0x130] sm:$0xff] %v434_v40  ;;  %v560_v40 = vld [vmem:[%s2529_s16 + $0x628] sm:$0xff] }
  0x37   : > { %437 = vst [vmem:[%s2534_s17 + $0x138] sm:$0xff] %v436_v41  ;;  %v562_v41 = vld [vmem:[%s2529_s16 + $0x630] sm:$0xff] }
  0x38   : > { %439 = vst [vmem:[%s2534_s17 + $0x140] sm:$0xff] %v438_v42  ;;  %v564_v42 = vld [vmem:[%s2529_s16 + $0x638] sm:$0xff] }
  0x39   : > { %441 = vst [vmem:[%s2534_s17 + $0x148] sm:$0xff] %v440_v43  ;;  %v566_v43 = vld [vmem:[%s2529_s16 + $0x640] sm:$0xff] }
  0x3a   : > { %443 = vst [vmem:[%s2534_s17 + $0x150] sm:$0xff] %v442_v44  ;;  %v568_v44 = vld [vmem:[%s2529_s16 + $0x648] sm:$0xff] }
  0x3b   : > { %445 = vst [vmem:[%s2534_s17 + $0x158] sm:$0xff] %v444_v45  ;;  %v570_v45 = vld [vmem:[%s2529_s16 + $0x650] sm:$0xff] }
  0x3c   : > { %447 = vst [vmem:[%s2534_s17 + $0x160] sm:$0xff] %v446_v46  ;;  %v572_v46 = vld [vmem:[%s2529_s16 + $0x658] sm:$0xff] }
  0x3d   : > { %449 = vst [vmem:[%s2534_s17 + $0x168] sm:$0xff] %v448_v47  ;;  %v574_v47 = vld [vmem:[%s2529_s16 + $0x660] sm:$0xff] }
  0x3e   : > { %451 = vst [vmem:[%s2534_s17 + $0x170] sm:$0xff] %v450_v48  ;;  %v576_v48 = vld [vmem:[%s2529_s16 + $0x668] sm:$0xff] }
  0x3f   : > { %453 = vst [vmem:[%s2534_s17 + $0x178] sm:$0xff] %v452_v49  ;;  %v578_v49 = vld [vmem:[%s2529_s16 + $0x670] sm:$0xff] }
  0x40   : > { %455 = vst [vmem:[%s2534_s17 + $0x180] sm:$0xff] %v454_v50  ;;  %v580_v50 = vld [vmem:[%s2529_s16 + $0x678] sm:$0xff] }
  0x41   : > { %457 = vst [vmem:[%s2534_s17 + $0x188] sm:$0xff] %v456_v51  ;;  %v582_v51 = vld [vmem:[%s2529_s16 + $0x700] sm:$0xff] }
  0x42   : > { %459 = vst [vmem:[%s2534_s17 + $0x190] sm:$0xff] %v458_v52  ;;  %v584_v52 = vld [vmem:[%s2529_s16 + $0x708] sm:$0xff] }
  0x43   : > { %461 = vst [vmem:[%s2534_s17 + $0x198] sm:$0xff] %v460_v53  ;;  %v586_v53 = vld [vmem:[%s2529_s16 + $0x710] sm:$0xff] }
  0x44   : > { %463 = vst [vmem:[%s2534_s17 + $0x1a0] sm:$0xff] %v462_v54  ;;  %v588_v54 = vld [vmem:[%s2529_s16 + $0x718] sm:$0xff] }
  0x45   : > { %465 = vst [vmem:[%s2534_s17 + $0x1a8] sm:$0xff] %v464_v55  ;;  %v590_v55 = vld [vmem:[%s2529_s16 + $0x720] sm:$0xff] }
  0x46   : > { %467 = vst [vmem:[%s2534_s17 + $0x1b0] sm:$0xff] %v466_v56  ;;  %v592_v56 = vld [vmem:[%s2529_s16 + $0x728] sm:$0xff] }
  0x47   : > { %469 = vst [vmem:[%s2534_s17 + $0x1b8] sm:$0xff] %v468_v57  ;;  %v594_v57 = vld [vmem:[%s2529_s16 + $0x730] sm:$0xff] }
  0x48   : > { %471 = vst [vmem:[%s2534_s17 + $0x1c0] sm:$0xff] %v470_v58  ;;  %v596_v58 = vld [vmem:[%s2529_s16 + $0x738] sm:$0xff] }
  0x49   : > { %473 = vst [vmem:[%s2534_s17 + $0x1c8] sm:$0xff] %v472_v59  ;;  %v598_v59 = vld [vmem:[%s2529_s16 + $0x740] sm:$0xff] }
  0x4a   : > { %475 = vst [vmem:[%s2534_s17 + $0x1d0] sm:$0xff] %v474_v60  ;;  %v600_v60 = vld [vmem:[%s2529_s16 + $0x748] sm:$0xff] }
  0x4b   : > { %477 = vst [vmem:[%s2534_s17 + $0x1d8] sm:$0xff] %v476_v61  ;;  %v602_v61 = vld [vmem:[%s2529_s16 + $0x750] sm:$0xff] }
  0x4c   : > { %479 = vst [vmem:[%s2534_s17 + $0x1e0] sm:$0xff] %v478_v62  ;;  %v604_v62 = vld [vmem:[%s2529_s16 + $0x758] sm:$0xff] }
  0x4d   : > { %481 = vst [vmem:[%s2534_s17 + $0x1e8] sm:$0xff] %v480_v63  ;;  %v606_v63 = vld [vmem:[%s2529_s16 + $0x760] sm:$0xff] }
  0x4e   : > { %483 = vst [vmem:[%s2534_s17 + $0x1f0] sm:$0xff] %v482_v0  ;;  %v608_v0 = vld [vmem:[%s2529_s16 + $0x768] sm:$0xff] }
  0x4f   : > { %485 = vst [vmem:[%s2534_s17 + $0x1f8] sm:$0xff] %v484_v2  ;;  %v610_v2 = vld [vmem:[%s2529_s16 + $0x770] sm:$0xff] }
  0x50   : > { %487 = vst [vmem:[%s2534_s17 + $0x200] sm:$0xff] %v486_v3  ;;  %v612_v3 = vld [vmem:[%s2529_s16 + $0x778] sm:$0xff] }
  0x51   : > { %489 = vst [vmem:[%s2534_s17 + $0x208] sm:$0xff] %v488_v4 }
  0x52   : > { %491 = vst [vmem:[%s2534_s17 + $0x210] sm:$0xff] %v490_v5 }
  0x53   : > { %493 = vst [vmem:[%s2534_s17 + $0x218] sm:$0xff] %v492_v6 }
  0x54   : > { %495 = vst [vmem:[%s2534_s17 + $0x220] sm:$0xff] %v494_v7 }
  0x55   : > { %497 = vst [vmem:[%s2534_s17 + $0x228] sm:$0xff] %v496_v8 }
  0x56   : > { %499 = vst [vmem:[%s2534_s17 + $0x230] sm:$0xff] %v498_v9 }
  0x57   : > { %501 = vst [vmem:[%s2534_s17 + $0x238] sm:$0xff] %v500_v10 }
  0x58   : > { %503 = vst [vmem:[%s2534_s17 + $0x240] sm:$0xff] %v502_v11 }
  0x59   : > { %505 = vst [vmem:[%s2534_s17 + $0x248] sm:$0xff] %v504_v12 }
  0x5a   : > { %507 = vst [vmem:[%s2534_s17 + $0x250] sm:$0xff] %v506_v13 }
  0x5b   : > { %509 = vst [vmem:[%s2534_s17 + $0x258] sm:$0xff] %v508_v14 }
  0x5c   : > { %511 = vst [vmem:[%s2534_s17 + $0x260] sm:$0xff] %v510_v15 }
  0x5d   : > { %513 = vst [vmem:[%s2534_s17 + $0x268] sm:$0xff] %v512_v16 }
  0x5e   : > { %515 = vst [vmem:[%s2534_s17 + $0x270] sm:$0xff] %v514_v17 }
  0x5f   : > { %517 = vst [vmem:[%s2534_s17 + $0x278] sm:$0xff] %v516_v18 }
  0x60   : > { %519 = vst [vmem:[%s2534_s17 + $0x280] sm:$0xff] %v518_v19 }
  0x61   : > { %521 = vst [vmem:[%s2534_s17 + $0x288] sm:$0xff] %v520_v20 }
  0x62   : > { %523 = vst [vmem:[%s2534_s17 + $0x290] sm:$0xff] %v522_v21 }
  0x63   : > { %525 = vst [vmem:[%s2534_s17 + $0x298] sm:$0xff] %v524_v22 }
  0x64   : > { %527 = vst [vmem:[%s2534_s17 + $0x2a0] sm:$0xff] %v526_v23 }
  0x65   : > { %529 = vst [vmem:[%s2534_s17 + $0x2a8] sm:$0xff] %v528_v24 }
  0x66   : > { %531 = vst [vmem:[%s2534_s17 + $0x2b0] sm:$0xff] %v530_v25 }
  0x67   : > { %533 = vst [vmem:[%s2534_s17 + $0x2b8] sm:$0xff] %v532_v26 }
  0x68   : > { %535 = vst [vmem:[%s2534_s17 + $0x2c0] sm:$0xff] %v534_v27 }
  0x69   : > { %537 = vst [vmem:[%s2534_s17 + $0x2c8] sm:$0xff] %v536_v28 }
  0x6a   : > { %539 = vst [vmem:[%s2534_s17 + $0x2d0] sm:$0xff] %v538_v29 }
  0x6b   : > { %541 = vst [vmem:[%s2534_s17 + $0x2d8] sm:$0xff] %v540_v30 }
  0x6c   : > { %543 = vst [vmem:[%s2534_s17 + $0x2e0] sm:$0xff] %v542_v31 }
  0x6d   : > { %545 = vst [vmem:[%s2534_s17 + $0x2e8] sm:$0xff] %v544_v32 }
  0x6e   : > { %547 = vst [vmem:[%s2534_s17 + $0x2f0] sm:$0xff] %v546_v33 }
  0x6f   : > { %549 = vst [vmem:[%s2534_s17 + $0x2f8] sm:$0xff] %v548_v34 }
  0x70   : > { %551 = vst [vmem:[%s2534_s17 + $0x300] sm:$0xff] %v550_v35 }
  0x71   : > { %553 = vst [vmem:[%s2534_s17 + $0x308] sm:$0xff] %v552_v36 }
  0x72   : > { %555 = vst [vmem:[%s2534_s17 + $0x310] sm:$0xff] %v554_v37 }
  0x73   : > { %557 = vst [vmem:[%s2534_s17 + $0x318] sm:$0xff] %v556_v38 }
  0x74   : > { %559 = vst [vmem:[%s2534_s17 + $0x320] sm:$0xff] %v558_v39 }
  0x75   : > { %561 = vst [vmem:[%s2534_s17 + $0x328] sm:$0xff] %v560_v40 }
  0x76   : > { %563 = vst [vmem:[%s2534_s17 + $0x330] sm:$0xff] %v562_v41 }
  0x77   : > { %565 = vst [vmem:[%s2534_s17 + $0x338] sm:$0xff] %v564_v42 }
  0x78   : > { %567 = vst [vmem:[%s2534_s17 + $0x340] sm:$0xff] %v566_v43 }
  0x79   : > { %569 = vst [vmem:[%s2534_s17 + $0x348] sm:$0xff] %v568_v44 }
  0x7a   : > { %571 = vst [vmem:[%s2534_s17 + $0x350] sm:$0xff] %v570_v45 }
  0x7b   : > { %573 = vst [vmem:[%s2534_s17 + $0x358] sm:$0xff] %v572_v46 }
  0x7c   : > { %575 = vst [vmem:[%s2534_s17 + $0x360] sm:$0xff] %v574_v47 }
  0x7d   : > { %577 = vst [vmem:[%s2534_s17 + $0x368] sm:$0xff] %v576_v48 }
  0x7e   : > { %579 = vst [vmem:[%s2534_s17 + $0x370] sm:$0xff] %v578_v49 }
  0x7f   : > { %581 = vst [vmem:[%s2534_s17 + $0x378] sm:$0xff] %v580_v50 }
  0x80   : > { %583 = vst [vmem:[%s2534_s17 + $0x380] sm:$0xff] %v582_v51 }
  0x81   : > { %585 = vst [vmem:[%s2534_s17 + $0x388] sm:$0xff] %v584_v52 }
  0x82   : > { %587 = vst [vmem:[%s2534_s17 + $0x390] sm:$0xff] %v586_v53 }
  0x83   : > { %589 = vst [vmem:[%s2534_s17 + $0x398] sm:$0xff] %v588_v54 }
  0x84   : > { %591 = vst [vmem:[%s2534_s17 + $0x3a0] sm:$0xff] %v590_v55 }
  0x85   : > { %593 = vst [vmem:[%s2534_s17 + $0x3a8] sm:$0xff] %v592_v56 }
  0x86   : > { %595 = vst [vmem:[%s2534_s17 + $0x3b0] sm:$0xff] %v594_v57 }
  0x87   : > { %597 = vst [vmem:[%s2534_s17 + $0x3b8] sm:$0xff] %v596_v58 }
  0x88   : > { %599 = vst [vmem:[%s2534_s17 + $0x3c0] sm:$0xff] %v598_v59 }
  0x89   : > { %601 = vst [vmem:[%s2534_s17 + $0x3c8] sm:$0xff] %v600_v60 }
  0x8a   : > { %603 = vst [vmem:[%s2534_s17 + $0x3d0] sm:$0xff] %v602_v61 }
  0x8b   : > { %605 = vst [vmem:[%s2534_s17 + $0x3d8] sm:$0xff] %v604_v62 }
  0x8c   : > { %607 = vst [vmem:[%s2534_s17 + $0x3e0] sm:$0xff] %v606_v63 }
  0x8d   : > { %609 = vst [vmem:[%s2534_s17 + $0x3e8] sm:$0xff] %v608_v0 }
  0x8e   : > { %611 = vst [vmem:[%s2534_s17 + $0x3f0] sm:$0xff] %v610_v2 }
  0x8f   : > { %613 = vst [vmem:[%s2534_s17 + $0x3f8] sm:$0xff] %v612_v3 }
  0x90 PF: > { %p2174_p2 = scmp.ge.s32.totalorder %s2489_s8, 1  ;;  %p618_p3 = scmp.lt.s32.totalorder %s2489_s8, 3 }
  0x92   : > { %p619_p4 = pnand %p2174_p2, %p618_p3 }
  0x93   : > { %s625_s18 = sand.u32 (!%p619_p4), 1, %s2167_s9   ;;  %s2440_s21 = sshll.u32 (!%p619_p4), %s2481_s6, 7 }
  0x94   : > { %622 = sbr.rel (%p619_p4) target bundleno = 607 (0x25f), region = 54  ;;  %s2175_s19 = sshll.u32 (!%p619_p4), %s625_s18, 10 }
  0x95   : > { %s2795_s20 = scalar_lea.vmem (!%p619_p4), [#allocation0], %s2175_s19  ;;  %s2837_s24 = scalar_lea.vmem (!%p619_p4), %s3069_s1, %s2440_s21 }
  0x99   : > { %2466 = vset.pattern.permute.xlu2 %v2501_v1  ;;  %2465 = vset.pattern.permute.xlu1 %v2501_v1  ;;  %v2183_v4 = vld [vmem:[%s2795_s20 + $0x20] sm:$0xff]  ;;  %v2179_v5 = vld [vmem:[%s2795_s20 + $0x10] sm:$0xff]  ;;  %v2185_v7 = vld [vmem:[%s2795_s20 + $0x28] sm:$0xff] }
  0x9a   : > { %v645_v6 = vld [vmem:[%s2795_s20] sm:$0xff]  ;;  %670 = vperm.xlu2 %2466, %v2183_v4   ;;  %658 = vperm.xlu1 %2465, %v2179_v5   ;;  %v2181_v8 = vld [vmem:[%s2795_s20 + $0x18] sm:$0xff]  ;;  %v2177_v9 = vld [vmem:[%s2795_s20 + $0x8] sm:$0xff] }
  0x9b   : > { %646 = vperm.xlu0 %4, %v645_v6   ;;  %v2191_v10 = vld [vmem:[%s2795_s20 + $0x40] sm:$0xff]  ;;  %v2189_v11 = vld [vmem:[%s2795_s20 + $0x38] sm:$0xff]  ;;  %v2187_v12 = vld [vmem:[%s2795_s20 + $0x30] sm:$0xff] }
  0x9c   : > { %v2197_v13 = vld [vmem:[%s2795_s20 + $0x58] sm:$0xff]  ;;  %v2195_v14 = vld [vmem:[%s2795_s20 + $0x50] sm:$0xff]  ;;  %v2193_v15 = vld [vmem:[%s2795_s20 + $0x48] sm:$0xff] }
  0x9d   : > { %v2203_v16 = vld [vmem:[%s2795_s20 + $0x70] sm:$0xff]  ;;  %v2201_v17 = vld [vmem:[%s2795_s20 + $0x68] sm:$0xff]  ;;  %v2199_v18 = vld [vmem:[%s2795_s20 + $0x60] sm:$0xff] }
  0x9e   : > { %v2209_v19 = vld [vmem:[%s2795_s20 + $0x88] sm:$0xff]  ;;  %v2207_v20 = vld [vmem:[%s2795_s20 + $0x80] sm:$0xff]  ;;  %v2205_v21 = vld [vmem:[%s2795_s20 + $0x78] sm:$0xff] }
  0x9f   : > { %v2215_v22 = vld [vmem:[%s2795_s20 + $0xa0] sm:$0xff]  ;;  %v2213_v23 = vld [vmem:[%s2795_s20 + $0x98] sm:$0xff]  ;;  %v2211_v24 = vld [vmem:[%s2795_s20 + $0x90] sm:$0xff] }
  0xa0   : > { %v2221_v25 = vld [vmem:[%s2795_s20 + $0xb8] sm:$0xff]  ;;  %v2219_v26 = vld [vmem:[%s2795_s20 + $0xb0] sm:$0xff]  ;;  %v2217_v27 = vld [vmem:[%s2795_s20 + $0xa8] sm:$0xff] }
  0xa1   : > { %v2227_v28 = vld [vmem:[%s2795_s20 + $0xd0] sm:$0xff]  ;;  %v2225_v29 = vld [vmem:[%s2795_s20 + $0xc8] sm:$0xff]  ;;  %v2223_v30 = vld [vmem:[%s2795_s20 + $0xc0] sm:$0xff] }
  0xa2   : > { %676 = vperm.xlu2 %2466, %v2185_v7   ;;  %664 = vperm.xlu1 %2465, %v2181_v8   ;;  %v2233_v31 = vld [vmem:[%s2795_s20 + $0xe8] sm:$0xff]  ;;  %v2231_v32 = vld [vmem:[%s2795_s20 + $0xe0] sm:$0xff]  ;;  %v2229_v33 = vld [vmem:[%s2795_s20 + $0xd8] sm:$0xff] }
  0xa3   : > { %652 = vperm.xlu0 %4, %v2177_v9   ;;  %v2239_v34 = vld [vmem:[%s2795_s20 + $0x100] sm:$0xff]  ;;  %v2237_v35 = vld [vmem:[%s2795_s20 + $0xf8] sm:$0xff]  ;;  %v2235_v36 = vld [vmem:[%s2795_s20 + $0xf0] sm:$0xff] }
  0xa4   : > { %v2245_v37 = vld [vmem:[%s2795_s20 + $0x118] sm:$0xff]  ;;  %v2243_v38 = vld [vmem:[%s2795_s20 + $0x110] sm:$0xff]  ;;  %v2241_v39 = vld [vmem:[%s2795_s20 + $0x108] sm:$0xff] }
  0xa5   : > { %v2251_v41 = vld [vmem:[%s2795_s20 + $0x130] sm:$0xff]  ;;  %v2249_v42 = vld [vmem:[%s2795_s20 + $0x128] sm:$0xff]  ;;  %v2247_v43 = vld [vmem:[%s2795_s20 + $0x120] sm:$0xff] }
  0xa6   : > { %v2257_v45 = vld [vmem:[%s2795_s20 + $0x148] sm:$0xff]  ;;  %v2255_v46 = vld [vmem:[%s2795_s20 + $0x140] sm:$0xff]  ;;  %v2253_v47 = vld [vmem:[%s2795_s20 + $0x138] sm:$0xff] }
  0xa7   : > { %v2263_v49 = vld [vmem:[%s2795_s20 + $0x160] sm:$0xff]  ;;  %v2261_v50 = vld [vmem:[%s2795_s20 + $0x158] sm:$0xff]  ;;  %v2259_v51 = vld [vmem:[%s2795_s20 + $0x150] sm:$0xff] }
  0xa8   : > { %v2269_v55 = vld [vmem:[%s2795_s20 + $0x178] sm:$0xff]  ;;  %v2267_v56 = vld [vmem:[%s2795_s20 + $0x170] sm:$0xff]  ;;  %v2265_v57 = vld [vmem:[%s2795_s20 + $0x168] sm:$0xff] }
  0xa9   : > { %v2275_v61 = vld [vmem:[%s2795_s20 + $0x190] sm:$0xff]  ;;  %v2273_v62 = vld [vmem:[%s2795_s20 + $0x188] sm:$0xff]  ;;  %v2271_v63 = vld [vmem:[%s2795_s20 + $0x180] sm:$0xff] }
  0xaa   : > { %694 = vperm.xlu2 %2466, %v2191_v10   ;;  %688 = vperm.xlu1 %2465, %v2189_v11   ;;  %v2281_v4 = vld [vmem:[%s2795_s20 + $0x1a8] sm:$0xff]  ;;  %v2279_v5 = vld [vmem:[%s2795_s20 + $0x1a0] sm:$0xff]  ;;  %v2277_v6 = vld [vmem:[%s2795_s20 + $0x198] sm:$0xff] }
  0xab   : > { %682 = vperm.xlu0 %4, %v2187_v12   ;;  %v2287_v10 = vld [vmem:[%s2795_s20 + $0x1c0] sm:$0xff]  ;;  %v2285_v11 = vld [vmem:[%s2795_s20 + $0x1b8] sm:$0xff]  ;;  %v2283_v12 = vld [vmem:[%s2795_s20 + $0x1b0] sm:$0xff] }
  0xb2   : > { %712 = vperm.xlu2 %2466, %v2197_v13   ;;  %706 = vperm.xlu1 %2465, %v2195_v14  }
  0xb3   : > { %700 = vperm.xlu0 %4, %v2193_v15  }
  0xba   : > { %730 = vperm.xlu2 %2466, %v2203_v16   ;;  %724 = vperm.xlu1 %2465, %v2201_v17   ;;  %v2293_v16 = vld [vmem:[%s2795_s20 + $0x1d8] sm:$0xff]  ;;  %v2291_v17 = vld [vmem:[%s2795_s20 + $0x1d0] sm:$0xff] }
  0xbb   : > { %718 = vperm.xlu0 %4, %v2199_v18   ;;  %v2289_v18 = vld [vmem:[%s2795_s20 + $0x1c8] sm:$0xff] }
  0xc2   : > { %748 = vperm.xlu2 %2466, %v2209_v19   ;;  %742 = vperm.xlu1 %2465, %v2207_v20  }
  0xc3   : > { %736 = vperm.xlu0 %4, %v2205_v21  }
  0xca   : > { %766 = vperm.xlu2 %2466, %v2215_v22   ;;  %760 = vperm.xlu1 %2465, %v2213_v23   ;;  %v2299_v22 = vld [vmem:[%s2795_s20 + $0x1f0] sm:$0xff]  ;;  %v2297_v23 = vld [vmem:[%s2795_s20 + $0x1e8] sm:$0xff] }
  0xcb   : > { %754 = vperm.xlu0 %4, %v2211_v24   ;;  %v2295_v24 = vld [vmem:[%s2795_s20 + $0x1e0] sm:$0xff] }
  0xd2   : > { %784 = vperm.xlu2 %2466, %v2221_v25   ;;  %778 = vperm.xlu1 %2465, %v2219_v26  }
  0xd3   : > { %772 = vperm.xlu0 %4, %v2217_v27  }
  0xda   : > { %802 = vperm.xlu2 %2466, %v2227_v28   ;;  %796 = vperm.xlu1 %2465, %v2225_v29   ;;  %v2305_v28 = vld [vmem:[%s2795_s20 + $0x208] sm:$0xff]  ;;  %v2303_v29 = vld [vmem:[%s2795_s20 + $0x200] sm:$0xff] }
  0xdb   : > { %790 = vperm.xlu0 %4, %v2223_v30   ;;  %v2301_v30 = vld [vmem:[%s2795_s20 + $0x1f8] sm:$0xff] }
  0xe2   : > { %820 = vperm.xlu2 %2466, %v2233_v31   ;;  %814 = vperm.xlu1 %2465, %v2231_v32  }
  0xe3   : > { %808 = vperm.xlu0 %4, %v2229_v33  }
  0xea   : > { %838 = vperm.xlu2 %2466, %v2239_v34   ;;  %832 = vperm.xlu1 %2465, %v2237_v35   ;;  %v2311_v34 = vld [vmem:[%s2795_s20 + $0x220] sm:$0xff]  ;;  %v2309_v35 = vld [vmem:[%s2795_s20 + $0x218] sm:$0xff] }
  0xeb   : > { %826 = vperm.xlu0 %4, %v2235_v36   ;;  %v2307_v36 = vld [vmem:[%s2795_s20 + $0x210] sm:$0xff] }
  0xf2   : > { %856 = vperm.xlu2 %2466, %v2245_v37   ;;  %850 = vperm.xlu1 %2465, %v2243_v38  }
  0xf3   : > { %844 = vperm.xlu0 %4, %v2241_v39  }
  0xf4   : > { %v671_v40 = vpop.permute.xlu2 %670 }
  0xf5   : > { %1719 = vst [vmem:[%s2837_s24 + $0x20] sm:$0xff] %v671_v40  ;;  %v2317_v40 = vld [vmem:[%s2795_s20 + $0x238] sm:$0xff] }
  0xfa   : > { %874 = vperm.xlu2 %2466, %v2251_v41   ;;  %868 = vperm.xlu1 %2465, %v2249_v42   ;;  %v2315_v41 = vld [vmem:[%s2795_s20 + $0x230] sm:$0xff]  ;;  %v2313_v42 = vld [vmem:[%s2795_s20 + $0x228] sm:$0xff] }
  0xfb   : > { %862 = vperm.xlu0 %4, %v2247_v43  }
  0xfc   : > { %v677_v44 = vpop.permute.xlu2 %676 }
  0xfd   : > { %1721 = vst [vmem:[%s2837_s24 + $0x28] sm:$0xff] %v677_v44 }
 0x102   : > { %892 = vperm.xlu2 %2466, %v2257_v45   ;;  %886 = vperm.xlu1 %2465, %v2255_v46   ;;  %v2323_v46 = vld [vmem:[%s2795_s20 + $0x250] sm:$0xff] }
 0x103   : > { %880 = vperm.xlu0 %4, %v2253_v47   ;;  %v2321_v47 = vld [vmem:[%s2795_s20 + $0x248] sm:$0xff] }
 0x104   : > { %v695_v48 = vpop.permute.xlu2 %694 }
 0x105   : > { %1727 = vst [vmem:[%s2837_s24 + $0x40] sm:$0xff] %v695_v48  ;;  %v2319_v48 = vld [vmem:[%s2795_s20 + $0x240] sm:$0xff] }
 0x10a   : > { %910 = vperm.xlu2 %2466, %v2263_v49   ;;  %904 = vperm.xlu1 %2465, %v2261_v50  }
 0x10b   : > { %898 = vperm.xlu0 %4, %v2259_v51  }
 0x10c   : > { %v713_v52 = vpop.permute.xlu2 %712  ;;  %v659_v53 = vpop.permute.xlu1 %658 }
 0x10d   : > { %v647_v54 = vpop.permute.xlu0 %646  ;;  %1733 = vst [vmem:[%s2837_s24 + $0x58] sm:$0xff] %v713_v52  ;;  %v2329_v52 = vld [vmem:[%s2795_s20 + $0x268] sm:$0xff] }
 0x10e   : > { %1715 = vst [vmem:[%s2837_s24 + $0x10] sm:$0xff] %v659_v53  ;;  %v2327_v53 = vld [vmem:[%s2795_s20 + $0x260] sm:$0xff] }
 0x10f   : > { %1711 = vst [vmem:[%s2837_s24] sm:$0xff] %v647_v54  ;;  %v2325_v54 = vld [vmem:[%s2795_s20 + $0x258] sm:$0xff] }
 0x112   : > { %928 = vperm.xlu2 %2466, %v2269_v55   ;;  %922 = vperm.xlu1 %2465, %v2267_v56  }
 0x113   : > { %916 = vperm.xlu0 %4, %v2265_v57  }
 0x114   : > { %v731_v58 = vpop.permute.xlu2 %730  ;;  %v665_v59 = vpop.permute.xlu1 %664 }
 0x115   : > { %v653_v60 = vpop.permute.xlu0 %652  ;;  %1739 = vst [vmem:[%s2837_s24 + $0x70] sm:$0xff] %v731_v58  ;;  %v2335_v58 = vld [vmem:[%s2795_s20 + $0x280] sm:$0xff] }
 0x116   : > { %1717 = vst [vmem:[%s2837_s24 + $0x18] sm:$0xff] %v665_v59  ;;  %v2333_v59 = vld [vmem:[%s2795_s20 + $0x278] sm:$0xff] }
 0x117   : > { %1713 = vst [vmem:[%s2837_s24 + $0x8] sm:$0xff] %v653_v60  ;;  %v2331_v60 = vld [vmem:[%s2795_s20 + $0x270] sm:$0xff] }
 0x11a   : > { %946 = vperm.xlu2 %2466, %v2275_v61   ;;  %940 = vperm.xlu1 %2465, %v2273_v62  }
 0x11b   : > { %934 = vperm.xlu0 %4, %v2271_v63  }
 0x11c   : > { %v749_v0 = vpop.permute.xlu2 %748  ;;  %v689_v2 = vpop.permute.xlu1 %688 }
 0x11d   : > { %v683_v3 = vpop.permute.xlu0 %682  ;;  %1745 = vst [vmem:[%s2837_s24 + $0x108] sm:$0xff] %v749_v0  ;;  %v2341_v0 = vld [vmem:[%s2795_s20 + $0x298] sm:$0xff] }
 0x11e   : > { %1725 = vst [vmem:[%s2837_s24 + $0x38] sm:$0xff] %v689_v2  ;;  %v2339_v2 = vld [vmem:[%s2795_s20 + $0x290] sm:$0xff] }
 0x11f   : > { %1723 = vst [vmem:[%s2837_s24 + $0x30] sm:$0xff] %v683_v3  ;;  %v2337_v3 = vld [vmem:[%s2795_s20 + $0x288] sm:$0xff] }
 0x122   : > { %964 = vperm.xlu2 %2466, %v2281_v4   ;;  %958 = vperm.xlu1 %2465, %v2279_v5  }
 0x123   : > { %952 = vperm.xlu0 %4, %v2277_v6  }
 0x124   : > { %v767_v7 = vpop.permute.xlu2 %766  ;;  %v707_v8 = vpop.permute.xlu1 %706 }
 0x125   : > { %v701_v9 = vpop.permute.xlu0 %700  ;;  %1751 = vst [vmem:[%s2837_s24 + $0x120] sm:$0xff] %v767_v7  ;;  %v2347_v7 = vld [vmem:[%s2795_s20 + $0x2b0] sm:$0xff] }
 0x126   : > { %1731 = vst [vmem:[%s2837_s24 + $0x50] sm:$0xff] %v707_v8  ;;  %v2345_v8 = vld [vmem:[%s2795_s20 + $0x2a8] sm:$0xff] }
 0x127   : > { %1729 = vst [vmem:[%s2837_s24 + $0x48] sm:$0xff] %v701_v9  ;;  %v2343_v9 = vld [vmem:[%s2795_s20 + $0x2a0] sm:$0xff] }
 0x12a   : > { %982 = vperm.xlu2 %2466, %v2287_v10   ;;  %976 = vperm.xlu1 %2465, %v2285_v11  }
 0x12b   : > { %970 = vperm.xlu0 %4, %v2283_v12  }
 0x12c   : > { %v785_v13 = vpop.permute.xlu2 %784  ;;  %v725_v14 = vpop.permute.xlu1 %724 }
 0x12d   : > { %v719_v15 = vpop.permute.xlu0 %718  ;;  %1757 = vst [vmem:[%s2837_s24 + $0x138] sm:$0xff] %v785_v13  ;;  %v2353_v13 = vld [vmem:[%s2795_s20 + $0x2c8] sm:$0xff] }
 0x12e   : > { %1737 = vst [vmem:[%s2837_s24 + $0x68] sm:$0xff] %v725_v14  ;;  %v2351_v14 = vld [vmem:[%s2795_s20 + $0x2c0] sm:$0xff] }
 0x12f   : > { %1735 = vst [vmem:[%s2837_s24 + $0x60] sm:$0xff] %v719_v15  ;;  %v2349_v15 = vld [vmem:[%s2795_s20 + $0x2b8] sm:$0xff] }
 0x132   : > { %1000 = vperm.xlu2 %2466, %v2293_v16   ;;  %994 = vperm.xlu1 %2465, %v2291_v17  }
 0x133   : > { %988 = vperm.xlu0 %4, %v2289_v18  }
 0x134   : > { %v803_v19 = vpop.permute.xlu2 %802  ;;  %v743_v20 = vpop.permute.xlu1 %742 }
 0x135   : > { %v737_v21 = vpop.permute.xlu0 %736  ;;  %1763 = vst [vmem:[%s2837_s24 + $0x150] sm:$0xff] %v803_v19  ;;  %v2359_v19 = vld [vmem:[%s2795_s20 + $0x2e0] sm:$0xff] }
 0x136   : > { %1743 = vst [vmem:[%s2837_s24 + $0x100] sm:$0xff] %v743_v20  ;;  %v2357_v20 = vld [vmem:[%s2795_s20 + $0x2d8] sm:$0xff] }
 0x137   : > { %1741 = vst [vmem:[%s2837_s24 + $0x78] sm:$0xff] %v737_v21  ;;  %v2355_v21 = vld [vmem:[%s2795_s20 + $0x2d0] sm:$0xff] }
 0x13a   : > { %1018 = vperm.xlu2 %2466, %v2299_v22   ;;  %1012 = vperm.xlu1 %2465, %v2297_v23  }
 0x13b   : > { %1006 = vperm.xlu0 %4, %v2295_v24  }
 0x13c   : > { %v821_v25 = vpop.permute.xlu2 %820  ;;  %v761_v26 = vpop.permute.xlu1 %760 }
 0x13d   : > { %v755_v27 = vpop.permute.xlu0 %754  ;;  %1769 = vst [vmem:[%s2837_s24 + $0x168] sm:$0xff] %v821_v25  ;;  %v2365_v25 = vld [vmem:[%s2795_s20 + $0x2f8] sm:$0xff] }
 0x13e   : > { %1749 = vst [vmem:[%s2837_s24 + $0x118] sm:$0xff] %v761_v26  ;;  %v2363_v26 = vld [vmem:[%s2795_s20 + $0x2f0] sm:$0xff] }
 0x13f   : > { %1747 = vst [vmem:[%s2837_s24 + $0x110] sm:$0xff] %v755_v27  ;;  %v2361_v27 = vld [vmem:[%s2795_s20 + $0x2e8] sm:$0xff] }
 0x142   : > { %1036 = vperm.xlu2 %2466, %v2305_v28   ;;  %1030 = vperm.xlu1 %2465, %v2303_v29  }
 0x143   : > { %1024 = vperm.xlu0 %4, %v2301_v30  }
 0x144   : > { %v839_v31 = vpop.permute.xlu2 %838  ;;  %v779_v32 = vpop.permute.xlu1 %778 }
 0x145   : > { %v773_v33 = vpop.permute.xlu0 %772  ;;  %1775 = vst [vmem:[%s2837_s24 + $0x200] sm:$0xff] %v839_v31  ;;  %v2371_v31 = vld [vmem:[%s2795_s20 + $0x310] sm:$0xff] }
 0x146   : > { %1755 = vst [vmem:[%s2837_s24 + $0x130] sm:$0xff] %v779_v32  ;;  %v2369_v32 = vld [vmem:[%s2795_s20 + $0x308] sm:$0xff] }
 0x147   : > { %1753 = vst [vmem:[%s2837_s24 + $0x128] sm:$0xff] %v773_v33  ;;  %v2367_v33 = vld [vmem:[%s2795_s20 + $0x300] sm:$0xff] }
 0x14a   : > { %1054 = vperm.xlu2 %2466, %v2311_v34   ;;  %1048 = vperm.xlu1 %2465, %v2309_v35  }
 0x14b   : > { %1042 = vperm.xlu0 %4, %v2307_v36  }
 0x14c   : > { %v857_v37 = vpop.permute.xlu2 %856  ;;  %v797_v38 = vpop.permute.xlu1 %796 }
 0x14d   : > { %v791_v39 = vpop.permute.xlu0 %790  ;;  %1781 = vst [vmem:[%s2837_s24 + $0x218] sm:$0xff] %v857_v37  ;;  %v2377_v37 = vld [vmem:[%s2795_s20 + $0x328] sm:$0xff] }
 0x14e   : > { %1761 = vst [vmem:[%s2837_s24 + $0x148] sm:$0xff] %v797_v38  ;;  %v2375_v38 = vld [vmem:[%s2795_s20 + $0x320] sm:$0xff] }
 0x14f   : > { %1759 = vst [vmem:[%s2837_s24 + $0x140] sm:$0xff] %v791_v39  ;;  %v2373_v39 = vld [vmem:[%s2795_s20 + $0x318] sm:$0xff] }
 0x152   : > { %1072 = vperm.xlu2 %2466, %v2317_v40   ;;  %1066 = vperm.xlu1 %2465, %v2315_v41  }
 0x153   : > { %1060 = vperm.xlu0 %4, %v2313_v42  }
 0x154   : > { %v875_v43 = vpop.permute.xlu2 %874  ;;  %v815_v44 = vpop.permute.xlu1 %814 }
 0x155   : > { %v809_v45 = vpop.permute.xlu0 %808  ;;  %1787 = vst [vmem:[%s2837_s24 + $0x230] sm:$0xff] %v875_v43  ;;  %v2383_v43 = vld [vmem:[%s2795_s20 + $0x340] sm:$0xff] }
 0x156   : > { %1767 = vst [vmem:[%s2837_s24 + $0x160] sm:$0xff] %v815_v44  ;;  %v2381_v44 = vld [vmem:[%s2795_s20 + $0x338] sm:$0xff] }
 0x157   : > { %1765 = vst [vmem:[%s2837_s24 + $0x158] sm:$0xff] %v809_v45  ;;  %v2379_v45 = vld [vmem:[%s2795_s20 + $0x330] sm:$0xff] }
 0x15a   : > { %1090 = vperm.xlu2 %2466, %v2323_v46   ;;  %1084 = vperm.xlu1 %2465, %v2321_v47  }
 0x15b   : > { %1078 = vperm.xlu0 %4, %v2319_v48  }
 0x15c   : > { %v893_v49 = vpop.permute.xlu2 %892  ;;  %v833_v50 = vpop.permute.xlu1 %832 }
 0x15d   : > { %v827_v51 = vpop.permute.xlu0 %826  ;;  %1793 = vst [vmem:[%s2837_s24 + $0x248] sm:$0xff] %v893_v49  ;;  %v2389_v49 = vld [vmem:[%s2795_s20 + $0x358] sm:$0xff] }
 0x15e   : > { %1773 = vst [vmem:[%s2837_s24 + $0x178] sm:$0xff] %v833_v50  ;;  %v2387_v50 = vld [vmem:[%s2795_s20 + $0x350] sm:$0xff] }
 0x15f   : > { %1771 = vst [vmem:[%s2837_s24 + $0x170] sm:$0xff] %v827_v51  ;;  %v2385_v51 = vld [vmem:[%s2795_s20 + $0x348] sm:$0xff] }
 0x162   : > { %1108 = vperm.xlu2 %2466, %v2329_v52   ;;  %1102 = vperm.xlu1 %2465, %v2327_v53  }
 0x163   : > { %1096 = vperm.xlu0 %4, %v2325_v54  }
 0x164   : > { %v911_v55 = vpop.permute.xlu2 %910  ;;  %v851_v56 = vpop.permute.xlu1 %850 }
 0x165   : > { %v845_v57 = vpop.permute.xlu0 %844  ;;  %1799 = vst [vmem:[%s2837_s24 + $0x260] sm:$0xff] %v911_v55  ;;  %v2395_v55 = vld [vmem:[%s2795_s20 + $0x370] sm:$0xff] }
 0x166   : > { %1779 = vst [vmem:[%s2837_s24 + $0x210] sm:$0xff] %v851_v56  ;;  %v2393_v56 = vld [vmem:[%s2795_s20 + $0x368] sm:$0xff] }
 0x167   : > { %1777 = vst [vmem:[%s2837_s24 + $0x208] sm:$0xff] %v845_v57  ;;  %v2391_v57 = vld [vmem:[%s2795_s20 + $0x360] sm:$0xff] }
 0x16a   : > { %1126 = vperm.xlu2 %2466, %v2335_v58   ;;  %1120 = vperm.xlu1 %2465, %v2333_v59  }
 0x16b   : > { %1114 = vperm.xlu0 %4, %v2331_v60  }
 0x16c   : > { %v929_v61 = vpop.permute.xlu2 %928  ;;  %v869_v62 = vpop.permute.xlu1 %868 }
 0x16d   : > { %v863_v63 = vpop.permute.xlu0 %862  ;;  %1805 = vst [vmem:[%s2837_s24 + $0x278] sm:$0xff] %v929_v61  ;;  %v2401_v61 = vld [vmem:[%s2795_s20 + $0x388] sm:$0xff] }
 0x16e   : > { %1785 = vst [vmem:[%s2837_s24 + $0x228] sm:$0xff] %v869_v62  ;;  %v2399_v62 = vld [vmem:[%s2795_s20 + $0x380] sm:$0xff] }
 0x16f   : > { %1783 = vst [vmem:[%s2837_s24 + $0x220] sm:$0xff] %v863_v63  ;;  %v2397_v63 = vld [vmem:[%s2795_s20 + $0x378] sm:$0xff] }
 0x172   : > { %1144 = vperm.xlu2 %2466, %v2341_v0   ;;  %1138 = vperm.xlu1 %2465, %v2339_v2  }
 0x173   : > { %1132 = vperm.xlu0 %4, %v2337_v3  }
 0x174   : > { %v947_v4 = vpop.permute.xlu2 %946  ;;  %v887_v5 = vpop.permute.xlu1 %886 }
 0x175   : > { %v881_v6 = vpop.permute.xlu0 %880  ;;  %1811 = vst [vmem:[%s2837_s24 + $0x310] sm:$0xff] %v947_v4  ;;  %v2407_v4 = vld [vmem:[%s2795_s20 + $0x3a0] sm:$0xff] }
 0x176   : > { %1791 = vst [vmem:[%s2837_s24 + $0x240] sm:$0xff] %v887_v5  ;;  %v2405_v5 = vld [vmem:[%s2795_s20 + $0x398] sm:$0xff] }
 0x177   : > { %1789 = vst [vmem:[%s2837_s24 + $0x238] sm:$0xff] %v881_v6  ;;  %v2403_v6 = vld [vmem:[%s2795_s20 + $0x390] sm:$0xff] }
 0x17a   : > { %1162 = vperm.xlu2 %2466, %v2347_v7   ;;  %1156 = vperm.xlu1 %2465, %v2345_v8  }
 0x17b   : > { %1150 = vperm.xlu0 %4, %v2343_v9  }
 0x17c   : > { %v965_v10 = vpop.permute.xlu2 %964  ;;  %v905_v11 = vpop.permute.xlu1 %904 }
 0x17d   : > { %v899_v12 = vpop.permute.xlu0 %898  ;;  %1817 = vst [vmem:[%s2837_s24 + $0x328] sm:$0xff] %v965_v10  ;;  %v2413_v10 = vld [vmem:[%s2795_s20 + $0x3b8] sm:$0xff] }
 0x17e   : > { %1797 = vst [vmem:[%s2837_s24 + $0x258] sm:$0xff] %v905_v11  ;;  %v2411_v11 = vld [vmem:[%s2795_s20 + $0x3b0] sm:$0xff] }
 0x17f   : > { %1795 = vst [vmem:[%s2837_s24 + $0x250] sm:$0xff] %v899_v12  ;;  %v2409_v12 = vld [vmem:[%s2795_s20 + $0x3a8] sm:$0xff] }
 0x182   : > { %1180 = vperm.xlu2 %2466, %v2353_v13   ;;  %1174 = vperm.xlu1 %2465, %v2351_v14  }
 0x183   : > { %1168 = vperm.xlu0 %4, %v2349_v15  }
 0x184   : > { %v983_v16 = vpop.permute.xlu2 %982  ;;  %v923_v17 = vpop.permute.xlu1 %922 }
 0x185   : > { %v917_v18 = vpop.permute.xlu0 %916  ;;  %1823 = vst [vmem:[%s2837_s24 + $0x340] sm:$0xff] %v983_v16  ;;  %v2419_v16 = vld [vmem:[%s2795_s20 + $0x3d0] sm:$0xff] }
 0x186   : > { %1803 = vst [vmem:[%s2837_s24 + $0x270] sm:$0xff] %v923_v17  ;;  %v2417_v17 = vld [vmem:[%s2795_s20 + $0x3c8] sm:$0xff] }
 0x187   : > { %1801 = vst [vmem:[%s2837_s24 + $0x268] sm:$0xff] %v917_v18  ;;  %v2415_v18 = vld [vmem:[%s2795_s20 + $0x3c0] sm:$0xff] }
 0x18a   : > { %1198 = vperm.xlu2 %2466, %v2359_v19   ;;  %1192 = vperm.xlu1 %2465, %v2357_v20  }
 0x18b   : > { %1186 = vperm.xlu0 %4, %v2355_v21  }
 0x18c   : > { %v1001_v22 = vpop.permute.xlu2 %1000  ;;  %v941_v23 = vpop.permute.xlu1 %940 }
 0x18d   : > { %v935_v24 = vpop.permute.xlu0 %934  ;;  %1829 = vst [vmem:[%s2837_s24 + $0x358] sm:$0xff] %v1001_v22  ;;  %v2425_v22 = vld [vmem:[%s2795_s20 + $0x3e8] sm:$0xff] }
 0x18e   : > { %1809 = vst [vmem:[%s2837_s24 + $0x308] sm:$0xff] %v941_v23  ;;  %v2423_v23 = vld [vmem:[%s2795_s20 + $0x3e0] sm:$0xff] }
 0x18f   : > { %1807 = vst [vmem:[%s2837_s24 + $0x300] sm:$0xff] %v935_v24  ;;  %v2421_v24 = vld [vmem:[%s2795_s20 + $0x3d8] sm:$0xff] }
 0x192   : > { %1216 = vperm.xlu2 %2466, %v2365_v25   ;;  %1210 = vperm.xlu1 %2465, %v2363_v26  }
 0x193   : > { %1204 = vperm.xlu0 %4, %v2361_v27  }
 0x194   : > { %v1019_v28 = vpop.permute.xlu2 %1018  ;;  %v959_v29 = vpop.permute.xlu1 %958 }
 0x195   : > { %v953_v30 = vpop.permute.xlu0 %952  ;;  %1835 = vst [vmem:[%s2837_s24 + $0x370] sm:$0xff] %v1019_v28  ;;  %v2429_v28 = vld [vmem:[%s2795_s20 + $0x3f8] sm:$0xff] }
 0x196   : > { %1815 = vst [vmem:[%s2837_s24 + $0x320] sm:$0xff] %v959_v29  ;;  %v2427_v29 = vld [vmem:[%s2795_s20 + $0x3f0] sm:$0xff] }
 0x197   : > { %1813 = vst [vmem:[%s2837_s24 + $0x318] sm:$0xff] %v953_v30 }
 0x19a   : > { %1234 = vperm.xlu2 %2466, %v2371_v31   ;;  %1228 = vperm.xlu1 %2465, %v2369_v32  }
 0x19b   : > { %1222 = vperm.xlu0 %4, %v2367_v33  }
 0x19c   : > { %v1037_v34 = vpop.permute.xlu2 %1036  ;;  %v977_v35 = vpop.permute.xlu1 %976 }
 0x19d   : > { %v971_v36 = vpop.permute.xlu0 %970  ;;  %1841 = vst [vmem:[%s2837_s24 + $0x408] sm:$0xff] %v1037_v34 }
 0x19e   : > { %1821 = vst [vmem:[%s2837_s24 + $0x338] sm:$0xff] %v977_v35 }
 0x19f   : > { %1819 = vst [vmem:[%s2837_s24 + $0x330] sm:$0xff] %v971_v36 }
 0x1a2   : > { %1252 = vperm.xlu2 %2466, %v2377_v37   ;;  %1246 = vperm.xlu1 %2465, %v2375_v38  }
 0x1a3   : > { %1240 = vperm.xlu0 %4, %v2373_v39  }
 0x1a4   : > { %v1055_v40 = vpop.permute.xlu2 %1054  ;;  %v995_v41 = vpop.permute.xlu1 %994 }
 0x1a5   : > { %v989_v42 = vpop.permute.xlu0 %988  ;;  %1847 = vst [vmem:[%s2837_s24 + $0x420] sm:$0xff] %v1055_v40 }
 0x1a6   : > { %1827 = vst [vmem:[%s2837_s24 + $0x350] sm:$0xff] %v995_v41 }
 0x1a7   : > { %1825 = vst [vmem:[%s2837_s24 + $0x348] sm:$0xff] %v989_v42 }
 0x1aa   : > { %1270 = vperm.xlu2 %2466, %v2383_v43   ;;  %1264 = vperm.xlu1 %2465, %v2381_v44  }
 0x1ab   : > { %1258 = vperm.xlu0 %4, %v2379_v45  }
 0x1ac   : > { %v1073_v46 = vpop.permute.xlu2 %1072  ;;  %v1013_v47 = vpop.permute.xlu1 %1012 }
 0x1ad   : > { %v1007_v48 = vpop.permute.xlu0 %1006  ;;  %1853 = vst [vmem:[%s2837_s24 + $0x438] sm:$0xff] %v1073_v46 }
 0x1ae   : > { %1833 = vst [vmem:[%s2837_s24 + $0x368] sm:$0xff] %v1013_v47 }
 0x1af   : > { %1831 = vst [vmem:[%s2837_s24 + $0x360] sm:$0xff] %v1007_v48 }
 0x1b2   : > { %1288 = vperm.xlu2 %2466, %v2389_v49   ;;  %1282 = vperm.xlu1 %2465, %v2387_v50  }
 0x1b3   : > { %1276 = vperm.xlu0 %4, %v2385_v51  }
 0x1b4   : > { %v1091_v52 = vpop.permute.xlu2 %1090  ;;  %v1031_v53 = vpop.permute.xlu1 %1030 }
 0x1b5   : > { %v1025_v54 = vpop.permute.xlu0 %1024  ;;  %1859 = vst [vmem:[%s2837_s24 + $0x450] sm:$0xff] %v1091_v52 }
 0x1b6   : > { %1839 = vst [vmem:[%s2837_s24 + $0x400] sm:$0xff] %v1031_v53 }
 0x1b7   : > { %1837 = vst [vmem:[%s2837_s24 + $0x378] sm:$0xff] %v1025_v54 }
 0x1ba   : > { %1306 = vperm.xlu2 %2466, %v2395_v55   ;;  %1300 = vperm.xlu1 %2465, %v2393_v56  }
 0x1bb   : > { %1294 = vperm.xlu0 %4, %v2391_v57  }
 0x1bc   : > { %v1109_v58 = vpop.permute.xlu2 %1108  ;;  %v1049_v59 = vpop.permute.xlu1 %1048 }
 0x1bd   : > { %v1043_v60 = vpop.permute.xlu0 %1042  ;;  %1865 = vst [vmem:[%s2837_s24 + $0x468] sm:$0xff] %v1109_v58 }
 0x1be   : > { %1845 = vst [vmem:[%s2837_s24 + $0x418] sm:$0xff] %v1049_v59 }
 0x1bf   : > { %1843 = vst [vmem:[%s2837_s24 + $0x410] sm:$0xff] %v1043_v60 }
 0x1c2   : > { %1324 = vperm.xlu2 %2466, %v2401_v61   ;;  %1318 = vperm.xlu1 %2465, %v2399_v62  }
 0x1c3   : > { %1312 = vperm.xlu0 %4, %v2397_v63  }
 0x1c4   : > { %v1127_v0 = vpop.permute.xlu2 %1126  ;;  %v1067_v2 = vpop.permute.xlu1 %1066 }
 0x1c5   : > { %v1061_v3 = vpop.permute.xlu0 %1060  ;;  %1871 = vst [vmem:[%s2837_s24 + $0x500] sm:$0xff] %v1127_v0 }
 0x1c6   : > { %1851 = vst [vmem:[%s2837_s24 + $0x430] sm:$0xff] %v1067_v2 }
 0x1c7   : > { %1849 = vst [vmem:[%s2837_s24 + $0x428] sm:$0xff] %v1061_v3 }
 0x1ca   : > { %1342 = vperm.xlu2 %2466, %v2407_v4   ;;  %1336 = vperm.xlu1 %2465, %v2405_v5  }
 0x1cb   : > { %1330 = vperm.xlu0 %4, %v2403_v6  }
 0x1cc   : > { %v1145_v7 = vpop.permute.xlu2 %1144  ;;  %v1085_v8 = vpop.permute.xlu1 %1084 }
 0x1cd   : > { %v1079_v9 = vpop.permute.xlu0 %1078  ;;  %1877 = vst [vmem:[%s2837_s24 + $0x518] sm:$0xff] %v1145_v7 }
 0x1ce   : > { %1857 = vst [vmem:[%s2837_s24 + $0x448] sm:$0xff] %v1085_v8 }
 0x1cf   : > { %1855 = vst [vmem:[%s2837_s24 + $0x440] sm:$0xff] %v1079_v9 }
 0x1d2   : > { %1360 = vperm.xlu2 %2466, %v2413_v10   ;;  %1354 = vperm.xlu1 %2465, %v2411_v11  }
 0x1d3   : > { %1348 = vperm.xlu0 %4, %v2409_v12  }
 0x1d4   : > { %v1163_v13 = vpop.permute.xlu2 %1162  ;;  %v1103_v14 = vpop.permute.xlu1 %1102 }
 0x1d5   : > { %v1097_v15 = vpop.permute.xlu0 %1096  ;;  %1883 = vst [vmem:[%s2837_s24 + $0x530] sm:$0xff] %v1163_v13 }
 0x1d6   : > { %1863 = vst [vmem:[%s2837_s24 + $0x460] sm:$0xff] %v1103_v14 }
 0x1d7   : > { %1861 = vst [vmem:[%s2837_s24 + $0x458] sm:$0xff] %v1097_v15 }
 0x1da   : > { %1378 = vperm.xlu2 %2466, %v2419_v16   ;;  %1372 = vperm.xlu1 %2465, %v2417_v17  }
 0x1db   : > { %1366 = vperm.xlu0 %4, %v2415_v18  }
 0x1dc   : > { %v1181_v19 = vpop.permute.xlu2 %1180  ;;  %v1121_v20 = vpop.permute.xlu1 %1120 }
 0x1dd   : > { %v1115_v21 = vpop.permute.xlu0 %1114  ;;  %1889 = vst [vmem:[%s2837_s24 + $0x548] sm:$0xff] %v1181_v19 }
 0x1de   : > { %1869 = vst [vmem:[%s2837_s24 + $0x478] sm:$0xff] %v1121_v20 }
 0x1df   : > { %1867 = vst [vmem:[%s2837_s24 + $0x470] sm:$0xff] %v1115_v21 }
 0x1e2   : > { %1396 = vperm.xlu2 %2466, %v2425_v22   ;;  %1390 = vperm.xlu1 %2465, %v2423_v23  }
 0x1e3   : > { %1384 = vperm.xlu0 %4, %v2421_v24  }
 0x1e4   : > { %v1199_v25 = vpop.permute.xlu2 %1198  ;;  %v1139_v26 = vpop.permute.xlu1 %1138 }
 0x1e5   : > { %v1133_v27 = vpop.permute.xlu0 %1132  ;;  %1895 = vst [vmem:[%s2837_s24 + $0x560] sm:$0xff] %v1199_v25 }
 0x1e6   : > { %1875 = vst [vmem:[%s2837_s24 + $0x510] sm:$0xff] %v1139_v26 }
 0x1e7   : > { %1873 = vst [vmem:[%s2837_s24 + $0x508] sm:$0xff] %v1133_v27 }
 0x1ea   : > { %1408 = vperm.xlu1 %2465, %v2429_v28  }
 0x1eb   : > { %1402 = vperm.xlu0 %4, %v2427_v29  }
 0x1ec   : > { %v1217_v30 = vpop.permute.xlu2 %1216  ;;  %v1157_v31 = vpop.permute.xlu1 %1156 }
 0x1ed   : > { %v1151_v32 = vpop.permute.xlu0 %1150  ;;  %1901 = vst [vmem:[%s2837_s24 + $0x578] sm:$0xff] %v1217_v30 }
 0x1ee   : > { %1881 = vst [vmem:[%s2837_s24 + $0x528] sm:$0xff] %v1157_v31 }
 0x1ef   : > { %1879 = vst [vmem:[%s2837_s24 + $0x520] sm:$0xff] %v1151_v32 }
 0x1f4   : > { %v1235_v33 = vpop.permute.xlu2 %1234  ;;  %v1175_v34 = vpop.permute.xlu1 %1174 }
 0x1f5   : > { %v1169_v35 = vpop.permute.xlu0 %1168  ;;  %1907 = vst [vmem:[%s2837_s24 + $0x610] sm:$0xff] %v1235_v33 }
 0x1f6   : > { %1887 = vst [vmem:[%s2837_s24 + $0x540] sm:$0xff] %v1175_v34 }
 0x1f7   : > { %1885 = vst [vmem:[%s2837_s24 + $0x538] sm:$0xff] %v1169_v35 }
 0x1fc   : > { %v1253_v36 = vpop.permute.xlu2 %1252  ;;  %v1193_v37 = vpop.permute.xlu1 %1192 }
 0x1fd   : > { %v1187_v38 = vpop.permute.xlu0 %1186  ;;  %1913 = vst [vmem:[%s2837_s24 + $0x628] sm:$0xff] %v1253_v36 }
 0x1fe   : > { %1893 = vst [vmem:[%s2837_s24 + $0x558] sm:$0xff] %v1193_v37 }
 0x1ff   : > { %1891 = vst [vmem:[%s2837_s24 + $0x550] sm:$0xff] %v1187_v38 }
 0x204   : > { %v1271_v39 = vpop.permute.xlu2 %1270  ;;  %v1211_v40 = vpop.permute.xlu1 %1210 }
 0x205   : > { %v1205_v41 = vpop.permute.xlu0 %1204  ;;  %1919 = vst [vmem:[%s2837_s24 + $0x640] sm:$0xff] %v1271_v39 }
 0x206   : > { %1899 = vst [vmem:[%s2837_s24 + $0x570] sm:$0xff] %v1211_v40 }
 0x207   : > { %1897 = vst [vmem:[%s2837_s24 + $0x568] sm:$0xff] %v1205_v41 }
 0x20c   : > { %v1289_v42 = vpop.permute.xlu2 %1288  ;;  %v1229_v43 = vpop.permute.xlu1 %1228 }
 0x20d   : > { %v1223_v44 = vpop.permute.xlu0 %1222  ;;  %1925 = vst [vmem:[%s2837_s24 + $0x658] sm:$0xff] %v1289_v42 }
 0x20e   : > { %1905 = vst [vmem:[%s2837_s24 + $0x608] sm:$0xff] %v1229_v43 }
 0x20f   : > { %1903 = vst [vmem:[%s2837_s24 + $0x600] sm:$0xff] %v1223_v44 }
 0x214   : > { %v1307_v45 = vpop.permute.xlu2 %1306  ;;  %v1247_v46 = vpop.permute.xlu1 %1246 }
 0x215   : > { %v1241_v47 = vpop.permute.xlu0 %1240  ;;  %1931 = vst [vmem:[%s2837_s24 + $0x670] sm:$0xff] %v1307_v45 }
 0x216   : > { %1911 = vst [vmem:[%s2837_s24 + $0x620] sm:$0xff] %v1247_v46 }
 0x217   : > { %1909 = vst [vmem:[%s2837_s24 + $0x618] sm:$0xff] %v1241_v47 }
 0x21c   : > { %v1325_v48 = vpop.permute.xlu2 %1324  ;;  %v1265_v49 = vpop.permute.xlu1 %1264 }
 0x21d   : > { %v1259_v50 = vpop.permute.xlu0 %1258  ;;  %1937 = vst [vmem:[%s2837_s24 + $0x708] sm:$0xff] %v1325_v48 }
 0x21e   : > { %1917 = vst [vmem:[%s2837_s24 + $0x638] sm:$0xff] %v1265_v49 }
 0x21f   : > { %1915 = vst [vmem:[%s2837_s24 + $0x630] sm:$0xff] %v1259_v50 }
 0x224   : > { %v1343_v51 = vpop.permute.xlu2 %1342  ;;  %v1283_v52 = vpop.permute.xlu1 %1282 }
 0x225   : > { %v1277_v53 = vpop.permute.xlu0 %1276  ;;  %1943 = vst [vmem:[%s2837_s24 + $0x720] sm:$0xff] %v1343_v51 }
 0x226   : > { %1923 = vst [vmem:[%s2837_s24 + $0x650] sm:$0xff] %v1283_v52 }
 0x227   : > { %1921 = vst [vmem:[%s2837_s24 + $0x648] sm:$0xff] %v1277_v53 }
 0x22c   : > { %v1361_v54 = vpop.permute.xlu2 %1360  ;;  %v1301_v55 = vpop.permute.xlu1 %1300 }
 0x22d   : > { %v1295_v56 = vpop.permute.xlu0 %1294  ;;  %1949 = vst [vmem:[%s2837_s24 + $0x738] sm:$0xff] %v1361_v54 }
 0x22e   : > { %1929 = vst [vmem:[%s2837_s24 + $0x668] sm:$0xff] %v1301_v55 }
 0x22f   : > { %1927 = vst [vmem:[%s2837_s24 + $0x660] sm:$0xff] %v1295_v56 }
 0x234   : > { %v1379_v57 = vpop.permute.xlu2 %1378  ;;  %v1319_v58 = vpop.permute.xlu1 %1318 }
 0x235   : > { %v1313_v59 = vpop.permute.xlu0 %1312  ;;  %1955 = vst [vmem:[%s2837_s24 + $0x750] sm:$0xff] %v1379_v57 }
 0x236   : > { %1935 = vst [vmem:[%s2837_s24 + $0x700] sm:$0xff] %v1319_v58 }
 0x237   : > { %1933 = vst [vmem:[%s2837_s24 + $0x678] sm:$0xff] %v1313_v59 }
 0x23c   : > { %v1397_v60 = vpop.permute.xlu2 %1396  ;;  %v1337_v61 = vpop.permute.xlu1 %1336 }
 0x23d   : > { %v1331_v62 = vpop.permute.xlu0 %1330  ;;  %1961 = vst [vmem:[%s2837_s24 + $0x768] sm:$0xff] %v1397_v60 }
 0x23e   : > { %1941 = vst [vmem:[%s2837_s24 + $0x718] sm:$0xff] %v1337_v61 }
 0x23f   : > { %1939 = vst [vmem:[%s2837_s24 + $0x710] sm:$0xff] %v1331_v62 }
 0x244   : > { %v1355_v63 = vpop.permute.xlu1 %1354 }
 0x245   : > { %v1349_v0 = vpop.permute.xlu0 %1348  ;;  %1947 = vst [vmem:[%s2837_s24 + $0x730] sm:$0xff] %v1355_v63 }
 0x246   : > { %1945 = vst [vmem:[%s2837_s24 + $0x728] sm:$0xff] %v1349_v0 }
 0x24c   : > { %v1373_v2 = vpop.permute.xlu1 %1372 }
 0x24d   : > { %v1367_v3 = vpop.permute.xlu0 %1366  ;;  %1953 = vst [vmem:[%s2837_s24 + $0x748] sm:$0xff] %v1373_v2 }
 0x24e   : > { %1951 = vst [vmem:[%s2837_s24 + $0x740] sm:$0xff] %v1367_v3 }
 0x254   : > { %v1391_v4 = vpop.permute.xlu1 %1390 }
 0x255   : > { %v1385_v5 = vpop.permute.xlu0 %1384  ;;  %1959 = vst [vmem:[%s2837_s24 + $0x760] sm:$0xff] %v1391_v4 }
 0x256   : > { %1957 = vst [vmem:[%s2837_s24 + $0x758] sm:$0xff] %v1385_v5 }
 0x25c   : > { %v1409_v6 = vpop.permute.xlu1 %1408 }
 0x25d   : > { %v1403_v7 = vpop.permute.xlu0 %1402  ;;  %1965 = vst [vmem:[%s2837_s24 + $0x778] sm:$0xff] %v1409_v6 }
 0x25e   : > { %1963 = vst [vmem:[%s2837_s24 + $0x770] sm:$0xff] %v1403_v7 }
 0x25f PF: > { %s10_s8 = sadd.s32 1, %s2489_s8   ;;  %s3070_s6 = smov %s2485_s7 }
 0x260   : > { %p7_p5 = scmp.ge.s32.totalorder %s10_s8, 4   ;;  %s3071_s7 = smov %s3073_s10 }
 0x262   :  { %9 = sbr.rel (!%p7_p5) target bundleno = 7 (0x7), region = 372 }

// kernel: factorized_spectral_conv3d.7
= control target key start
LH: loop header
LB: loop body
LE: loop exit
PB: predicated region body
PF: predicated region fallthrough
CT: control target
= control target key end

     0   :  { %s1538_s13 = smov 0   ;;  %s1540_s14 = smov 0   ;;  %s1683_s0 = inlined_call_operand.vmem [shape: f32[2,4,4096], index: 0, kind: input, shape index: {}]   ;;  %s1684_s1 = inlined_call_operand.vmem [shape: f32[2,4,4096], index: 1, kind: input, shape index: {}]   ;;  %s1685_s2 = inlined_call_operand.vmem [shape: f32[2,4,4096], index: 2, kind: input, shape index: {}]   ;;  %s1686_s3 = inlined_call_operand.vmem [shape: f32[16,4], index: 3, kind: input, shape index: {}]   ;;  %s1687_s4 = inlined_call_operand.vmem [shape: f32[16,1], index: 4, kind: input, shape index: {}]   ;;  %s1688_s5 = inlined_call_operand.vmem [shape: f32[4,8], index: 5, kind: input, shape index: {}]   ;;  %s1689_s6 = inlined_call_operand.vmem [shape: f32[4,1], index: 6, kind: input, shape index: {}]   ;;  %s1690_s7 = inlined_call_operand.vmem [shape: f32[4,8], index: 7, kind: input, shape index: {}]   ;;  %s1691_s8 = inlined_call_operand.vmem [shape: f32[4,1], index: 8, kind: input, shape index: {}]   ;;  %s1692_s9 = inlined_call_operand.vmem [shape: f32[2,4,4096], index: 9, kind: output, shape index: {0}]   ;;  %s1693_s10 = inlined_call_operand.vmem [shape: f32[2,4,4096], index: 10, kind: output, shape index: {1}]  }
   0x1   :  { %s1542_s15 = smov 0   ;;  %s1544_s16 = smov 0  }
   0x2   :  { %s1546_s17 = smov 0  }
   0x3 LB: > { %s30_s18 = sadd.s32 1, %s1472_s15  ;;  %s33_s19 = sadd.s32 1, %s1476_s16  ;;  %s1480_s17 = sphi %s1546_s17, %s21_s17   ;;  %s1476_s16 = sphi %s1544_s16, %s1697_s16   ;;  %s1472_s15 = sphi %s1542_s15, %s1696_s15   ;;  %s1468_s14 = sphi %s1540_s14, %s1695_s14   ;;  %s1464_s13 = sphi %s1538_s13, %s1694_s13  }
   0x4   : > { %p31_p0 = scmp.ge.s32.totalorder %s30_s18, 4  ;;  %p1341_p1 = scmp.ge.s32.totalorder %s1480_s17, 1 }
   0x5   : > { %p372_p2 = scmp.lt.s32.totalorder %s1480_s17, 9 }
   0x6   : > { %s1699_s18 = smov (%p31_p0, %s30_s18), 0  ;;  %s1701_s19 = smov (!%p31_p0, %s33_s19), %s1476_s16 }
   0x7   : > { %p373_p3 = pnand %p1341_p1, %p372_p2  ;;  %p35_p4 = scmp.ge.s32.totalorder %s1701_s19, 2 }
   0x8   : > { %s1342_s20 = sshll.u32 (!%p373_p3), %s1464_s13, 3  ;;  %p446_p5 = scmp.lt.s32.totalorder (!%p373_p3), %s1468_s14, 1 }
   0x9   : > { %s1703_s19 = smov (%p35_p4, %s1701_s19), 0  ;;  %376 = sbr.rel (%p373_p3) target bundleno = 343 (0x157), region = 56 }
   0xa   : > { %p448_p6 = scmp.lt.s32.totalorder (!%p373_p3), %s1342_s20, 31 }
   0xe   : > { %v1482_v0 = vmov 0   ;;  %v517_v1 = vld [vmem:[%s1687_s4] sm:$0xff]  ;;  %s1705_s14 = smov (!%p446_p5, %s1468_s14), 1  ;;  %s1707_s20 = smov (!%p448_p6, %s1342_s20), 31  ;;  %v518_v20 = vld [vmem:[%s1687_s4 + $0x8] sm:$0xff]  ;;  %vm555_vm0 = vcmask 1043456  }
   0xf   : > { %1440 = vset.pattern.permute.xlu0 %v1482_v0  ;;  %1441 = vset.pattern.permute.xlu1 %v1482_v0  ;;  %s1343_s23 = sshll.u32 %s1705_s14, 5  ;;  %v515_v23 = vld [vmem:[%s1686_s3] sm:$0xff]  ;;  %vm548_vm1 = vcmask 31744   ;;  %v516_v32 = vld [vmem:[%s1686_s3 + $0x8] sm:$0xff]  ;;  %vm779_vm2 = vcmask 64512  }
  0x10   : > { %521 = vperm.xlu0 %1440, %v517_v1   ;;  %s451_s24 = sadd.s32 %s1343_s23, %s1707_s20  ;;  %v772_v40 = vld [vmem:[%s1688_s5] sm:$0xf] }
  0x11   : > { %s1571_s25 = sshll.u32 %s451_s24, 2  ;;  %v773_v41 = vld [vmem:[%s1689_s6] sm:$0xf] }
  0x12   : > { %s453_s28 = scalar_lea.vmem %s1683_s0, %s1571_s25  ;;  %s463_s11 = scalar_lea.vmem %s1684_s1, %s1571_s25  ;;  %776 = vperm.xlu1 %1441, %v773_v41   ;;  %v968_v51 = vld [vmem:[%s1691_s8] sm:$0xf] }
  0x13   : > { %s473_s21 = scalar_lea.vmem %s1685_s2, %s1571_s25  ;;  %v495_v2 = vld [vmem:[%s453_s28] sm:$0xff]  ;;  %v496_v4 = vld [vmem:[%s453_s28 + $0x8] sm:$0xff]  ;;  %v498_v10 = vld [vmem:[%s453_s28 + $0x18] sm:$0xff]  ;;  %s1650_s22 = scalar_lea.vmem %s1692_s9, %s1571_s25 }
  0x14   : > { %v499_v3 = vld [vmem:[%s463_s11] sm:$0xff]  ;;  %v500_v7 = vld [vmem:[%s463_s11 + $0x8] sm:$0xff]  ;;  %v502_v11 = vld [vmem:[%s463_s11 + $0x18] sm:$0xff]  ;;  %s493_s26 = scalar_lea.vmem %s1693_s10, %s1571_s25 }
  0x15   : > { %v503_v5 = vadd.f32 %v499_v3, %v495_v2  ;;  %v507_v6 = vld [vmem:[%s473_s21] sm:$0xff]  ;;  %v508_v8 = vld [vmem:[%s473_s21 + $0x8] sm:$0xff]  ;;  %v504_v9 = vadd.f32 %v500_v7, %v496_v4  ;;  %v510_v12 = vld [vmem:[%s473_s21 + $0x18] sm:$0xff]  ;;  %v506_v14 = vadd.f32 %v502_v11, %v498_v10 }
  0x16   : > { %v497_v15 = vld [vmem:[%s453_s28 + $0x10] sm:$0xff] }
  0x17   : > { %v511_v13 = vadd.f32 %v507_v6, %v503_v5  ;;  %v501_v16 = vld [vmem:[%s463_s11 + $0x10] sm:$0xff]  ;;  %v512_v18 = vadd.f32 %v508_v8, %v504_v9  ;;  %v514_v21 = vadd.f32 %v510_v12, %v506_v14 }
  0x18   : > { %v509_v17 = vld [vmem:[%s473_s21 + $0x10] sm:$0xff]  ;;  %v505_v19 = vadd.f32 %v501_v16, %v497_v15  ;;  %526 = vperm.xlu0 %1440, %v518_v20   ;;  %v967_v16 = vld [vmem:[%s1690_s7] sm:$0xf] }
  0x19   : > { %533 = vst [vmem:[#allocation1] ss:$2 sm:$0xff] %v511_v13 }
  0x1a   : > { %535 = vst [vmem:[#allocation1 + $0x10] ss:$2 sm:$0xff] %v512_v18  ;;  %v513_v22 = vadd.f32 %v509_v17, %v505_v19  ;;  %971 = vperm.xlu1 %1441, %v968_v51  }
  0x1b   : > { %539 = vst [vmem:[#allocation1 + $0x30] ss:$2 sm:$0xff] %v514_v21 }
  0x1c   : > { %537 = vst [vmem:[#allocation1 + $0x20] ss:$2 sm:$0xff] %v513_v22 }
  0x20   : > { %v540_v24 = vld.sshfl [vmem:[#allocation1] sm:$0xff pattern:$0x75316420]  ;;  %v541_v25 = vld.sshfl [vmem:[#allocation1 + $0x8] sm:$0xff pattern:$0x75316420] }
  0x21   : > { %1357 = vmatpush.msk.msra.mxu0 %vm555_vm0, %v540_v24  ;;  %1360 = vmatpush.msk.msra.mxu1 %vm555_vm0, %v541_v25  ;;  %v542_v26 = vld.sshfl [vmem:[#allocation1 + $0x10] sm:$0xff pattern:$0x75316420]  ;;  %v543_v27 = vld.sshfl [vmem:[#allocation1 + $0x18] sm:$0xff pattern:$0x75316420] }
  0x22   : > { %1363 = vmatpush.msk.msra.mxu2 %vm555_vm0, %v542_v26  ;;  %1366 = vmatpush.msk.msra.mxu3 %vm555_vm0, %v543_v27  ;;  %v547_v28 = vld.sshfl [vmem:[#allocation1 + $0x38] sm:$0xff pattern:$0x75316420]  ;;  %v546_v29 = vld.sshfl [vmem:[#allocation1 + $0x30] sm:$0xff pattern:$0x75316420] }
  0x23   : > { %1358 = vmatmul.msk.f32.vlgmr.msra.gmra.mxu0 %vm548_vm1, %v515_v23  ;;  %1361 = vmatmul.msk.f32.vlgmr.msra.gmra.mxu1 %vm548_vm1, %v515_v23  ;;  %v544_v30 = vld.sshfl [vmem:[#allocation1 + $0x20] sm:$0xff pattern:$0x75316420]  ;;  %v545_v31 = vld.sshfl [vmem:[#allocation1 + $0x28] sm:$0xff pattern:$0x75316420] }
  0x24   : > { %1364 = vmatmul.msk.f32.vlgmr.msra.gmra.mxu2 %vm548_vm1, %v515_v23  ;;  %1367 = vmatmul.msk.f32.vlgmr.msra.gmra.mxu3 %vm548_vm1, %v515_v23 }
  0x25   : > { %1378 = vmatpush.msk.msrb.mxu3 %vm555_vm0, %v547_v28  ;;  %1375 = vmatpush.msk.msrb.mxu2 %vm555_vm0, %v546_v29 }
  0x26   : > { %1369 = vmatpush.msk.msrb.mxu0 %vm555_vm0, %v544_v30  ;;  %1372 = vmatpush.msk.msrb.mxu1 %vm555_vm0, %v545_v31 }
  0x2b   : > { %1359 = vmatmul.msk.f32.gmra.mxu0 %vm548_vm1, %v516_v32  ;;  %1362 = vmatmul.msk.f32.gmra.mxu1 %vm548_vm1, %v516_v32 }
  0x2c   : > { %1365 = vmatmul.msk.f32.gmra.mxu2 %vm548_vm1, %v516_v32  ;;  %1368 = vmatmul.msk.f32.gmra.mxu3 %vm548_vm1, %v516_v32 }
  0x33   : > { %1370 = vmatmul.msk.f32.vlgmr.msrb.gmra.mxu0 %vm548_vm1, %v515_v23  ;;  %1373 = vmatmul.msk.f32.vlgmr.msrb.gmra.mxu1 %vm548_vm1, %v515_v23 }
  0x34   : > { %1376 = vmatmul.msk.f32.vlgmr.msrb.gmra.mxu2 %vm548_vm1, %v515_v23  ;;  %1379 = vmatmul.msk.f32.vlgmr.msrb.gmra.mxu3 %vm548_vm1, %v515_v23 }
  0x3b   : > { %1371 = vmatmul.msk.f32.gmra.mxu0 %vm548_vm1, %v516_v32  ;;  %1374 = vmatmul.msk.f32.gmra.mxu1 %vm548_vm1, %v516_v32 }
  0x3c   : > { %1377 = vmatmul.msk.f32.gmra.mxu2 %vm548_vm1, %v516_v32  ;;  %1380 = vmatmul.msk.f32.gmra.mxu3 %vm548_vm1, %v516_v32 }
  0x82   : > { %v522_v33 = vpop.permute.xlu0 %521 }
  0x84   : > { %v777_v23 = vpop.permute.xlu1 %776 }
  0x8a   : > { %v527_v50 = vpop.permute.xlu0 %526 }
  0xa0   : > { %v589_v34 = vpop.f32.mrf.mxu0  ;;  %v612_v35 = vpop.f32.mrf.mxu1 }
  0xa1   : > { %v590_v36 = vadd.f32 %v589_v34, %v522_v33  ;;  %v613_v37 = vadd.f32 %v612_v35, %v522_v33 }
  0xa3   : > { %v756_v38 = vmax.f32 %v590_v36, 0.0  ;;  %v757_v39 = vmax.f32 %v613_v37, 0.0 }
  0xa5   : > { %798 = vmatpush.msra.mxu0 %v756_v38  ;;  %818 = vmatpush.msra.mxu1 %v757_v39 }
  0xa6   : > { %1381 = vmatmul.msk.f32.vlgmr.msra.gmra.mxu0 %vm779_vm2, %v772_v40  ;;  %1382 = vmatmul.msk.f32.vlgmr.msra.gmra.mxu1 %vm779_vm2, %v772_v40 }
  0xa7   : > { %v635_v42 = vpop.f32.mrf.mxu2  ;;  %v658_v43 = vpop.f32.mrf.mxu3 }
  0xa8   : > { %v636_v44 = vadd.f32 %v635_v42, %v522_v33  ;;  %v659_v45 = vadd.f32 %v658_v43, %v522_v33  ;;  %v592_v46 = vpop.f32.mrf.mxu0  ;;  %v615_v47 = vpop.f32.mrf.mxu1 }
  0xa9   : > { %v593_v54 = vadd.f32 %v592_v46, %v527_v50  ;;  %v616_v55 = vadd.f32 %v615_v47, %v527_v50  ;;  %v972_v42 = vpop.permute.xlu1 %971 }
  0xaa   : > { %v758_v48 = vmax.f32 %v636_v44, 0.0  ;;  %v759_v49 = vmax.f32 %v659_v45, 0.0 }
  0xab   : > { %v764_v62 = vmax.f32 %v593_v54, 0.0  ;;  %v765_v63 = vmax.f32 %v616_v55, 0.0 }
  0xac   : > { %838 = vmatpush.msra.mxu2 %v758_v48  ;;  %858 = vmatpush.msra.mxu3 %v759_v49 }
  0xad   : > { %1383 = vmatmul.msk.f32.vlgmr.msra.gmra.mxu2 %vm779_vm2, %v772_v40  ;;  %1384 = vmatmul.msk.f32.vlgmr.msra.gmra.mxu3 %vm779_vm2, %v772_v40 }
  0xaf   : > { %v638_v52 = vpop.f32.mrf.mxu2  ;;  %v661_v53 = vpop.f32.mrf.mxu3 }
  0xb0   : > { %v681_v56 = vpop.f32.mrf.mxu0  ;;  %v704_v57 = vpop.f32.mrf.mxu1  ;;  %v639_v2 = vadd.f32 %v638_v52, %v527_v50  ;;  %v662_v3 = vadd.f32 %v661_v53, %v527_v50 }
  0xb1   : > { %v682_v58 = vadd.f32 %v681_v56, %v522_v33  ;;  %v705_v59 = vadd.f32 %v704_v57, %v522_v33 }
  0xb2   : > { %v766_v14 = vmax.f32 %v639_v2, 0.0  ;;  %v767_v15 = vmax.f32 %v662_v3, 0.0 }
  0xb3   : > { %v760_v60 = vmax.f32 %v682_v58, 0.0  ;;  %v761_v61 = vmax.f32 %v705_v59, 0.0 }
  0xb5   : > { %878 = vmatpush.msrb.mxu0 %v760_v60  ;;  %898 = vmatpush.msrb.mxu1 %v761_v61 }
  0xb6   : > { %1385 = vmatmul.msk.f32.vlgmr.msrb.gmra.mxu0 %vm779_vm2, %v772_v40  ;;  %1386 = vmatmul.msk.f32.vlgmr.msrb.gmra.mxu1 %vm779_vm2, %v772_v40 }
  0xb7   : > { %992 = vmatpush.msra.mxu0 %v764_v62  ;;  %1012 = vmatpush.msra.mxu1 %v765_v63  ;;  %v727_v0 = vpop.f32.mrf.mxu2  ;;  %v750_v1 = vpop.f32.mrf.mxu3 }
  0xb8   : > { %v728_v4 = vadd.f32 %v727_v0, %v522_v33  ;;  %v751_v5 = vadd.f32 %v750_v1, %v522_v33  ;;  %v684_v6 = vpop.f32.mrf.mxu0  ;;  %v707_v7 = vpop.f32.mrf.mxu1 }
  0xb9   : > { %v685_v8 = vadd.f32 %v684_v6, %v527_v50  ;;  %v708_v9 = vadd.f32 %v707_v7, %v527_v50 }
  0xba   : > { %v762_v10 = vmax.f32 %v728_v4, 0.0  ;;  %v763_v11 = vmax.f32 %v751_v5, 0.0 }
  0xbb   : > { %v768_v12 = vmax.f32 %v685_v8, 0.0  ;;  %v769_v13 = vmax.f32 %v708_v9, 0.0 }
  0xbc   : > { %918 = vmatpush.msrb.mxu2 %v762_v10  ;;  %938 = vmatpush.msrb.mxu3 %v763_v11 }
  0xbd   : > { %1387 = vmatmul.msk.f32.vlgmr.msrb.gmra.mxu2 %vm779_vm2, %v772_v40  ;;  %1388 = vmatmul.msk.f32.vlgmr.msrb.gmra.mxu3 %vm779_vm2, %v772_v40 }
  0xbe   : > { %1032 = vmatpush.msra.mxu2 %v766_v14  ;;  %1052 = vmatpush.msra.mxu3 %v767_v15 }
  0xbf   : > { %1072 = vmatpush.msrb.mxu0 %v768_v12  ;;  %1092 = vmatpush.msrb.mxu1 %v769_v13  ;;  %v730_v17 = vpop.f32.mrf.mxu2  ;;  %v753_v18 = vpop.f32.mrf.mxu3 }
  0xc0   : > { %v731_v19 = vadd.f32 %v730_v17, %v527_v50  ;;  %v754_v20 = vadd.f32 %v753_v18, %v527_v50  ;;  %1390 = vmatmul.msk.f32.vlgmr.msra.gmra.mxu1 %vm779_vm2, %v967_v16  ;;  %1389 = vmatmul.msk.f32.vlgmr.msra.gmra.mxu0 %vm779_vm2, %v967_v16 }
  0xc2   : > { %v770_v21 = vmax.f32 %v731_v19, 0.0  ;;  %v771_v22 = vmax.f32 %v754_v20, 0.0 }
  0xc4   : > { %1112 = vmatpush.msrb.mxu2 %v770_v21  ;;  %1132 = vmatpush.msrb.mxu3 %v771_v22 }
  0xc5   : > { %1391 = vmatmul.msk.f32.vlgmr.msra.gmra.mxu2 %vm779_vm2, %v967_v16  ;;  %1392 = vmatmul.msk.f32.vlgmr.msra.gmra.mxu3 %vm779_vm2, %v967_v16 }
  0xc8   : > { %1394 = vmatmul.msk.f32.vlgmr.msrb.gmra.mxu1 %vm779_vm2, %v967_v16  ;;  %1393 = vmatmul.msk.f32.vlgmr.msrb.gmra.mxu0 %vm779_vm2, %v967_v16 }
  0xcd   : > { %1395 = vmatmul.msk.f32.vlgmr.msrb.gmra.mxu2 %vm779_vm2, %v967_v16  ;;  %1396 = vmatmul.msk.f32.vlgmr.msrb.gmra.mxu3 %vm779_vm2, %v967_v16 }
 0x123   : > { %v820_v24 = vpop.f32.mrf.mxu1  ;;  %v800_v25 = vpop.f32.mrf.mxu0 }
 0x124   : > { %v821_v26 = vadd.f32 %v820_v24, %v777_v23  ;;  %v801_v27 = vadd.f32 %v800_v25, %v777_v23 }
 0x126   : > { %v951_v28 = vrot.slane %v821_v26, 4 }
 0x128   : > { %v955_v29 = vsel %vm555_vm0, %v801_v27, %v951_v28 }
 0x129   : > { %963 = vst [vmem:[%s1650_s22] sm:$0xff] %v955_v29 }
 0x130   : > { %v840_v30 = vpop.f32.mrf.mxu2  ;;  %v860_v31 = vpop.f32.mrf.mxu3 }
 0x131   : > { %v861_v32 = vadd.f32 %v860_v31, %v777_v23  ;;  %v841_v33 = vadd.f32 %v840_v30, %v777_v23 }
 0x133   : > { %v952_v34 = vrot.slane %v861_v32, 4  ;;  %v900_v35 = vpop.f32.mrf.mxu1  ;;  %v880_v36 = vpop.f32.mrf.mxu0 }
 0x134   : > { %v881_v37 = vadd.f32 %v880_v36, %v777_v23  ;;  %v901_v38 = vadd.f32 %v900_v35, %v777_v23 }
 0x135   : > { %v956_v39 = vsel %vm555_vm0, %v841_v33, %v952_v34 }
 0x136   : > { %964 = vst [vmem:[%s1650_s22 + $0x8] sm:$0xff] %v956_v39  ;;  %v953_v40 = vrot.slane %v901_v38, 4 }
 0x138   : > { %v957_v41 = vsel %vm555_vm0, %v881_v37, %v953_v40 }
 0x139   : > { %965 = vst [vmem:[%s1650_s22 + $0x10] sm:$0xff] %v957_v41 }
 0x13d   : > { %v1014_v43 = vpop.f32.mrf.mxu1  ;;  %v994_v44 = vpop.f32.mrf.mxu0 }
 0x13e   : > { %v995_v45 = vadd.f32 %v994_v44, %v972_v42  ;;  %v1015_v46 = vadd.f32 %v1014_v43, %v972_v42 }
 0x140   : > { %v920_v47 = vpop.f32.mrf.mxu2  ;;  %v940_v48 = vpop.f32.mrf.mxu3  ;;  %v1145_v49 = vrot.slane %v1015_v46, 4 }
 0x141   : > { %v921_v50 = vadd.f32 %v920_v47, %v777_v23  ;;  %v941_v51 = vadd.f32 %v940_v48, %v777_v23 }
 0x142   : > { %v1149_v52 = vsel %vm555_vm0, %v995_v45, %v1145_v49 }
 0x143   : > { %v954_v53 = vrot.slane %v941_v51, 4  ;;  %1157 = vst [vmem:[%s493_s26] sm:$0xff] %v1149_v52 }
 0x145   : > { %v958_v54 = vsel %vm555_vm0, %v921_v50, %v954_v53  ;;  %v1094_v55 = vpop.f32.mrf.mxu1  ;;  %v1074_v56 = vpop.f32.mrf.mxu0 }
 0x146   : > { %966 = vst [vmem:[%s1650_s22 + $0x18] sm:$0xff] %v958_v54  ;;  %v1095_v57 = vadd.f32 %v1094_v55, %v972_v42  ;;  %v1075_v58 = vadd.f32 %v1074_v56, %v972_v42 }
 0x148   : > { %v1034_v59 = vpop.f32.mrf.mxu2  ;;  %v1054_v60 = vpop.f32.mrf.mxu3  ;;  %v1147_v61 = vrot.slane %v1095_v57, 4 }
 0x149   : > { %v1055_v62 = vadd.f32 %v1054_v60, %v972_v42  ;;  %v1035_v0 = vadd.f32 %v1034_v59, %v972_v42 }
 0x14a   : > { %v1151_v63 = vsel %vm555_vm0, %v1075_v58, %v1147_v61 }
 0x14b   : > { %v1146_v1 = vrot.slane %v1055_v62, 4  ;;  %1159 = vst [vmem:[%s493_s26 + $0x10] sm:$0xff] %v1151_v63 }
 0x14d   : > { %v1150_v2 = vsel %vm555_vm0, %v1035_v0, %v1146_v1 }
 0x14e   : > { %1158 = vst [vmem:[%s493_s26 + $0x8] sm:$0xff] %v1150_v2 }
 0x150   : > { %v1114_v3 = vpop.f32.mrf.mxu2  ;;  %v1134_v4 = vpop.f32.mrf.mxu3 }
 0x151   : > { %v1135_v5 = vadd.f32 %v1134_v4, %v972_v42  ;;  %v1115_v6 = vadd.f32 %v1114_v3, %v972_v42 }
 0x153   : > { %v1148_v7 = vrot.slane %v1135_v5, 4 }
 0x155   : > { %v1152_v8 = vsel %vm555_vm0, %v1115_v6, %v1148_v7 }
 0x156   : > { %1160 = vst [vmem:[%s493_s26 + $0x18] sm:$0xff] %v1152_v8 }
 0x157 PF: > { %s21_s17 = sadd.s32 1, %s1480_s17   ;;  %s1694_s13 = smov %s1472_s15 }
 0x158   : > { %p18_p7 = scmp.ge.s32.totalorder %s21_s17, 10   ;;  %s1695_s14 = smov %s1476_s16 }
 0x159   : > { %s1696_s15 = smov %s1699_s18  ;;  %s1697_s16 = smov %s1703_s19 }
 0x15a   :  { %20 = sbr.rel (!%p18_p7) target bundleno = 3 (0x3), region = 107 }

</bundles_post_ra>
